<compile_context>
chip_gen: v7x
topology: tpu7x:2x2x1
jax: 0.10.0
libtpu: 0.0.40
codegen_flags: <defaults>
</compile_context>

<pallas_src>
import functools

import jax
import jax.numpy as jnp
from jax import lax
from jax.experimental import pallas as pl
from jax.experimental.pallas import tpu as pltpu

# ----------------------------------------------------------------------------
# Scaled-down hyper-parameters (structure identical to nn.Transformer defaults)
# ----------------------------------------------------------------------------
D_MODEL = 64            # TODO(synk): original d_model = 512
NHEAD = 16              # matches the module (nhead=16)
HEAD_DIM = D_MODEL // NHEAD
DIM_FF = 128            # TODO(synk): original dim_feedforward = 2048
NUM_ENC = 2             # TODO(synk): original num_encoder_layers = 12
NUM_DEC = 2             # TODO(synk): original num_decoder_layers = 6
LN_EPS = 1e-5
LIN_IN = D_MODEL
LIN_OUT = D_MODEL // 2  # mirrors the 2:1 halving of Linear(2001*2, 2001)

COMPUTE_DTYPE = jnp.bfloat16   # MXU-friendly; accumulation / LN / softmax in f32


# ----------------------------------------------------------------------------
# Pallas kernels
# ----------------------------------------------------------------------------
def _linear_kernel(x_ref, w_ref, b_ref, o_ref):
    # x: (N, Din) bf16, w: (Din, Dout) bf16 (pre-transposed), b: (1, Dout) f32
    y = jnp.dot(x_ref[...], w_ref[...], preferred_element_type=jnp.float32)
    o_ref[...] = (y + b_ref[...]).astype(o_ref.dtype)


def _ffn_add_ln_kernel(x_ref, w1_ref, b1_ref, w2_ref, b2_ref,
                       g_ref, bln_ref, o_ref, *, eps):
    # LN( relu(x @ w1 + b1) @ w2 + b2 + x )  — DIM_FF intermediate stays in VMEM.
    h = jnp.dot(x_ref[...], w1_ref[...], preferred_element_type=jnp.float32)
    h = jnp.maximum(h + b1_ref[...], 0.0)
    y = jnp.dot(h.astype(w2_ref.dtype), w2_ref[...],
                preferred_element_type=jnp.float32)
    y = y + b2_ref[...] + x_ref[...].astype(jnp.float32)   # residual = x
    mean = jnp.mean(y, axis=-1, keepdims=True)
    var = jnp.mean((y - mean) ** 2, axis=-1, keepdims=True)
    yhat = (y - mean) * lax.rsqrt(var + eps)
    o_ref[...] = (yhat * g_ref[...] + bln_ref[...]).astype(o_ref.dtype)


def _attn_out_ln_kernel(q_ref, k_ref, v_ref, wo_ref, bo_ref, r_ref,
                        g_ref, bln_ref, o_ref, *, scale, eps):
    # One batch element per grid step; all NHEAD heads processed together.
    # q: (1, H, Sq, Dh), k/v: (1, H, Sk, Dh) bf16
    # wo: (H, Dh, D) bf16 — merged-head projection, output is lane-dense (Sq, D)
    q = q_ref[0]
    k = k_ref[0]
    v = v_ref[0]
    s = jnp.einsum("hqd,hkd->hqk", q, k,
                   preferred_element_type=jnp.float32) * scale
    m = jnp.max(s, axis=-1, keepdims=True)
    p = jnp.exp(s - m)
    denom = jnp.sum(p, axis=-1, keepdims=True)
    p = p * pl.reciprocal(denom, approx=True)          # EUP slot, ~free
    o = jnp.einsum("hqk,hkd->hqd", p.astype(v.dtype), v,
                   preferred_element_type=jnp.float32)
    # merged-head output projection: (H,Sq,Dh) x (H,Dh,D) -> sum_h -> (Sq, D)
    y = jnp.einsum("hqd,hde->hqe", o.astype(wo_ref.dtype), wo_ref[...],
                   preferred_element_type=jnp.float32)
    y = jnp.sum(y, axis=0) + bo_ref[...] + r_ref[0].astype(jnp.float32)
    mean = jnp.mean(y, axis=-1, keepdims=True)
    var = jnp.mean((y - mean) ** 2, axis=-1, keepdims=True)
    yhat = (y - mean) * lax.rsqrt(var + eps)
    o_ref[0] = (yhat * g_ref[...] + bln_ref[...]).astype(o_ref.dtype)


def _ln_kernel(x_ref, g_ref, b_ref, o_ref, *, eps):
    y = x_ref[...].astype(jnp.float32)
    mean = jnp.mean(y, axis=-1, keepdims=True)
    var = jnp.mean((y - mean) ** 2, axis=-1, keepdims=True)
    o_ref[...] = ((y - mean) * lax.rsqrt(var + eps) * g_ref[...]
                  + b_ref[...]).astype(o_ref.dtype)


# ----------------------------------------------------------------------------
# Pallas wrappers
# ----------------------------------------------------------------------------
# TODO(synk): at real model sizes (d_model=512, large S*B) these grid=(1,)
#             full-array linears should be row-tiled (grid=(cdiv(N, TN),),
#             TN sized against the per-chip VMEM budget, dimension_semantics
#             ("parallel",), explicit vmem_limit_bytes) to pipeline DMA with
#             MXU work and shard across v7x's two TensorCores.  At the toy
#             sizes used here a single resident block is optimal.
def pallas_linear(x2d, w, b=None, out_dtype=COMPUTE_DTYPE):
    n, din = x2d.shape
    dout = w.shape[1]
    if b is None:
        b = jnp.zeros((dout,), jnp.float32)
    return pl.pallas_call(
        _linear_kernel,
        out_shape=jax.ShapeDtypeStruct((n, dout), out_dtype),
        grid=(1,),
        in_specs=[
            pl.BlockSpec((n, din), lambda i: (0, 0)),
            pl.BlockSpec((din, dout), lambda i: (0, 0)),
            pl.BlockSpec((1, dout), lambda i: (0, 0)),
        ],
        out_specs=pl.BlockSpec((n, dout), lambda i: (0, 0)),
    )(x2d, w, b.reshape(1, dout))


def pallas_ffn_add_ln(x2d, w1, b1, w2, b2, gamma, beta):
    n, d = x2d.shape
    f = w1.shape[1]
    return pl.pallas_call(
        functools.partial(_ffn_add_ln_kernel, eps=LN_EPS),
        out_shape=jax.ShapeDtypeStruct((n, d), COMPUTE_DTYPE),
        grid=(1,),
        in_specs=[
            pl.BlockSpec((n, d), lambda i: (0, 0)),
            pl.BlockSpec((d, f), lambda i: (0, 0)),
            pl.BlockSpec((1, f), lambda i: (0, 0)),
            pl.BlockSpec((f, d), lambda i: (0, 0)),
            pl.BlockSpec((1, d), lambda i: (0, 0)),
            pl.BlockSpec((1, d), lambda i: (0, 0)),
            pl.BlockSpec((1, d), lambda i: (0, 0)),
        ],
        out_specs=pl.BlockSpec((n, d), lambda i: (0, 0)),
    )(x2d, w1, b1.reshape(1, f), w2, b2.reshape(1, d),
      gamma.reshape(1, d), beta.reshape(1, d))


def pallas_attn_out_ln(q, k, v, wo_h, bo, res, gamma, beta):
    # q: (B, H, Sq, Dh), k/v: (B, H, Sk, Dh), res: (B, Sq, D) → out (B, Sq, D)
    b, h, sq, dh = q.shape
    sk = k.shape[2]
    d = h * dh
    scale = 1.0 / float(dh) ** 0.5
    return pl.pallas_call(
        functools.partial(_attn_out_ln_kernel, scale=scale, eps=LN_EPS),
        out_shape=jax.ShapeDtypeStruct((b, sq, d), COMPUTE_DTYPE),
        grid=(b,),
        in_specs=[
            pl.BlockSpec((1, h, sq, dh), lambda i: (i, 0, 0, 0)),
            pl.BlockSpec((1, h, sk, dh), lambda i: (i, 0, 0, 0)),
            pl.BlockSpec((1, h, sk, dh), lambda i: (i, 0, 0, 0)),
            pl.BlockSpec((h, dh, d), lambda i: (0, 0, 0)),
            pl.BlockSpec((1, d), lambda i: (0, 0)),
            pl.BlockSpec((1, sq, d), lambda i: (i, 0, 0)),
            pl.BlockSpec((1, d), lambda i: (0, 0)),
            pl.BlockSpec((1, d), lambda i: (0, 0)),
        ],
        out_specs=pl.BlockSpec((1, sq, d), lambda i: (i, 0, 0)),
        compiler_params=pltpu.CompilerParams(
            dimension_semantics=("parallel",)),
    )(q, k, v, wo_h, bo.reshape(1, d), res,
      gamma.reshape(1, d), beta.reshape(1, d))


def pallas_layernorm(x_bsd, gamma, beta):
    b, s, d = x_bsd.shape
    x2 = x_bsd.reshape(b * s, d)
    y = pl.pallas_call(
        functools.partial(_ln_kernel, eps=LN_EPS),
        out_shape=jax.ShapeDtypeStruct((b * s, d), COMPUTE_DTYPE),
        grid=(1,),
        in_specs=[pl.BlockSpec((b * s, d), lambda i: (0, 0)),
                  pl.BlockSpec((1, d), lambda i: (0, 0)),
                  pl.BlockSpec((1, d), lambda i: (0, 0))],
        out_specs=pl.BlockSpec((b * s, d), lambda i: (0, 0)),
    )(x2, gamma.reshape(1, d), beta.reshape(1, d))
    return y.reshape(b, s, d)


# ----------------------------------------------------------------------------
# nn.Transformer building blocks (post-LayerNorm, like PyTorch norm_first=False)
# Internal activation layout is batch-first (B, S, D); no masks are applied
# (nn.Transformer.forward with mask=None applies none either).
# ----------------------------------------------------------------------------
def _split_heads(x2d, b, s):
    # (B*S, D) -> (B, H, S, Dh)
    return x2d.reshape(b, s, NHEAD, HEAD_DIM).transpose(0, 2, 1, 3)


def self_attention_block(x_bsd, p, gamma, beta):
    b, s, d = x_bsd.shape
    qkv = pallas_linear(x_bsd.reshape(b * s, d), p["wqkv"], p["bqkv"])
    q = _split_heads(qkv[:, :D_MODEL], b, s)
    k = _split_heads(qkv[:, D_MODEL:2 * D_MODEL], b, s)
    v = _split_heads(qkv[:, 2 * D_MODEL:], b, s)
    return pallas_attn_out_ln(q, k, v, p["wo_h"], p["bo"], x_bsd, gamma, beta)


def cross_attention_block(x_bsd, mem_bsd, p, gamma, beta):
    b, sq, d = x_bsd.shape
    sk = mem_bsd.shape[1]
    q2 = pallas_linear(x_bsd.reshape(b * sq, d), p["wq"], p["bq"])
    kv = pallas_linear(mem_bsd.reshape(b * sk, d), p["wkv"], p["bkv"])
    q = _split_heads(q2, b, sq)
    k = _split_heads(kv[:, :D_MODEL], b, sk)
    v = _split_heads(kv[:, D_MODEL:], b, sk)
    return pallas_attn_out_ln(q, k, v, p["wo_h"], p["bo"], x_bsd, gamma, beta)


def ffn_block(x_bsd, p, gamma, beta):
    b, s, d = x_bsd.shape
    y = pallas_ffn_add_ln(x_bsd.reshape(b * s, d), p["w1"], p["b1"],
                          p["w2"], p["b2"], gamma, beta)
    return y.reshape(b, s, d)


def encoder_layer(src, p):
    src = self_attention_block(src, p["self_attn"], p["norm1_g"], p["norm1_b"])
    src = ffn_block(src, p, p["norm2_g"], p["norm2_b"])
    return src


def decoder_layer(tgt, memory, p):
    tgt = self_attention_block(tgt, p["self_attn"], p["norm1_g"], p["norm1_b"])
    tgt = cross_attention_block(tgt, memory, p["cross_attn"],
                                p["norm2_g"], p["norm2_b"])
    tgt = ffn_block(tgt, p, p["norm3_g"], p["norm3_b"])
    return tgt


def transformer_forward(params, x):
    out = jnp.transpose(x, (0, 1, 2))     # permute(0, 1, 2) — identity
    src = tgt = out                       # TODO(synk): src=tgt=x stand-in for broken single-arg call
    src_b = jnp.transpose(src, (1, 0, 2)).astype(COMPUTE_DTYPE)   # (B, S, D)
    tgt_b = jnp.transpose(tgt, (1, 0, 2)).astype(COMPUTE_DTYPE)

    memory = src_b
    for lp in params["enc_layers"]:
        memory = encoder_layer(memory, lp)
    memory = pallas_layernorm(memory, params["enc_norm_g"], params["enc_norm_b"])

    y = tgt_b
    for lp in params["dec_layers"]:
        y = decoder_layer(y, memory, lp)
    y = pallas_layernorm(y, params["dec_norm_g"], params["dec_norm_b"])
    # `h0` from `out, h0 = self.rnn1(out)` has no counterpart; ignored.

    b, s, d = y.shape
    out2 = pallas_linear(y.reshape(b * s, d), params["final_w"], None,
                         out_dtype=jnp.float32)            # bias=False
    return jnp.transpose(out2.reshape(b, s, LIN_OUT), (1, 0, 2))   # (S, B, *)


# ----------------------------------------------------------------------------
# Deterministic parameter initialization.
# Weights are stored pre-transposed as (Din, Dout) in bf16 (PyTorch's
# (Dout, Din) layout would be transposed once at load time); biases and
# LayerNorm params stay f32.
# ----------------------------------------------------------------------------
def init_params(key):
    keys = iter(jax.random.split(key, 512))

    def nrm(shape):
        return (jax.random.normal(next(keys), shape, jnp.float32)
                * 0.05).astype(COMPUTE_DTYPE)

    def zf32(shape):
        return jnp.zeros(shape, jnp.float32)

    def ln():
        return jnp.ones((D_MODEL,), jnp.float32), jnp.zeros((D_MODEL,), jnp.float32)

    def self_mha():
        return {"wqkv": nrm((D_MODEL, 3 * D_MODEL)), "bqkv": zf32((3 * D_MODEL,)),
                "wo_h": nrm((NHEAD, HEAD_DIM, D_MODEL)), "bo": zf32((D_MODEL,))}

    def cross_mha():
        return {"wq": nrm((D_MODEL, D_MODEL)), "bq": zf32((D_MODEL,)),
                "wkv": nrm((D_MODEL, 2 * D_MODEL)), "bkv": zf32((2 * D_MODEL,)),
                "wo_h": nrm((NHEAD, HEAD_DIM, D_MODEL)), "bo": zf32((D_MODEL,))}

    enc_layers = []
    for _ in range(NUM_ENC):
        g1, b1 = ln(); g2, b2 = ln()
        enc_layers.append({
            "self_attn": self_mha(),
            "w1": nrm((D_MODEL, DIM_FF)), "b1": zf32((DIM_FF,)),
            "w2": nrm((DIM_FF, D_MODEL)), "b2": zf32((D_MODEL,)),
            "norm1_g": g1, "norm1_b": b1, "norm2_g": g2, "norm2_b": b2,
        })

    dec_layers = []
    for _ in range(NUM_DEC):
        g1, b1 = ln(); g2, b2 = ln(); g3, b3 = ln()
        dec_layers.append({
            "self_attn": self_mha(), "cross_attn": cross_mha(),
            "w1": nrm((D_MODEL, DIM_FF)), "b1": zf32((DIM_FF,)),
            "w2": nrm((DIM_FF, D_MODEL)), "b2": zf32((D_MODEL,)),
            "norm1_g": g1, "norm1_b": b1, "norm2_g": g2, "norm2_b": b2,
            "norm3_g": g3, "norm3_b": b3,
        })

    eg, eb = ln()
    dg, db = ln()
    return {
        "enc_layers": enc_layers,
        "dec_layers": dec_layers,
        "enc_norm_g": eg, "enc_norm_b": eb,
        "dec_norm_g": dg, "dec_norm_b": db,
        "final_w": nrm((LIN_IN, LIN_OUT)),
    }


# ----------------------------------------------------------------------------
if __name__ == "__main__":
    key = jax.random.PRNGKey(0)
    pkey, xkey = jax.random.split(key)
    params = init_params(pkey)

    S, B = 8, 2                                   # small seq / batch
    x = jax.random.normal(xkey, (S, B, D_MODEL), jnp.float32)   # (S, B, E)

    fwd = jax.jit(transformer_forward)
    out = jax.block_until_ready(fwd(params, x))
    assert out.shape == (S, B, LIN_OUT), out.shape
    assert bool(jnp.all(jnp.isfinite(out)))
    print("KERNEL_OK")
</pallas_src>

<mosaic_0001>
module attributes {stable_mosaic.version = 11 : i64} {
  func.func @_linear_kernel(%arg0: i32, %arg1: memref<16x64xbf16, #tpu.memory_space<vmem>>, %arg2: memref<64x192xbf16, #tpu.memory_space<vmem>>, %arg3: memref<1x192xf32, #tpu.memory_space<vmem>>, %arg4: memref<16x192xbf16, #tpu.memory_space<vmem>>) attributes {dimension_semantics = [#tpu.dimension_semantics<arbitrary>], iteration_bounds = array<i64: 1>, scalar_prefetch = 0 : i64, scratch_operands = 0 : i64, tpu.core_type = #tpu.core_type<tc>, window_params = [{pipeline_mode = #tpu.pipeline_mode<synchronous>, transform_indices = @transform_0, window_bounds = array<i64: 16, 64>}, {pipeline_mode = #tpu.pipeline_mode<synchronous>, transform_indices = @transform_1, window_bounds = array<i64: 64, 192>}, {pipeline_mode = #tpu.pipeline_mode<synchronous>, transform_indices = @transform_2, window_bounds = array<i64: 1, 192>}, {pipeline_mode = #tpu.pipeline_mode<synchronous>, transform_indices = @transform_3, window_bounds = array<i64: 16, 192>}]} {
    %c0 = arith.constant 0 : index
    %c0_0 = arith.constant 0 : index
    %0 = vector.load %arg1[%c0, %c0_0] : memref<16x64xbf16, #tpu.memory_space<vmem>>, vector<16x64xbf16>
    %c0_1 = arith.constant 0 : index
    %c0_2 = arith.constant 0 : index
    %1 = vector.load %arg2[%c0_1, %c0_2] : memref<64x192xbf16, #tpu.memory_space<vmem>>, vector<64x192xbf16>
    %cst = arith.constant dense<0.000000e+00> : vector<16x192xf32>
    %2 = tpu.matmul %0, %1, %cst {dimension_numbers = #tpu.dot_dimension_numbers<[1], [0], [0], [1], [0, 0, 1, 1], [], []>} : vector<16x64xbf16>, vector<64x192xbf16>, vector<16x192xf32> -> vector<16x192xf32>
    %c0_3 = arith.constant 0 : index
    %c0_4 = arith.constant 0 : index
    %3 = vector.load %arg3[%c0_3, %c0_4] : memref<1x192xf32, #tpu.memory_space<vmem>>, vector<1x192xf32>
    %4 = vector.broadcast %3 : vector<1x192xf32> to vector<16x192xf32>
    %5 = arith.addf %2, %4 : vector<16x192xf32>
    %6 = arith.truncf %5 : vector<16x192xf32> to vector<16x192xbf16>
    %c0_5 = arith.constant 0 : index
    %c0_6 = arith.constant 0 : index
    %7 = vector.load %arg4[%c0_5, %c0_6] : memref<16x192xbf16, #tpu.memory_space<vmem>>, vector<16x192xbf16>
    tpu.vector_store %arg4[%c0_5, %c0_6], %6 {strides = array<i32>} : memref<16x192xbf16, #tpu.memory_space<vmem>>, vector<16x192xbf16>,
    return
  }
  func.func @transform_0(%arg0: i32) -> (i32, i32) {
    %c0_i32 = arith.constant 0 : i32
    %c0_i32_0 = arith.constant 0 : i32
    %c0_i32_1 = arith.constant 0 : i32
    return %c0_i32, %c0_i32_0 : i32, i32
  }
  func.func @transform_1(%arg0: i32) -> (i32, i32) {
    %c0_i32 = arith.constant 0 : i32
    %c0_i32_0 = arith.constant 0 : i32
    %c0_i32_1 = arith.constant 0 : i32
    return %c0_i32, %c0_i32_0 : i32, i32
  }
  func.func @transform_2(%arg0: i32) -> (i32, i32) {
    %c0_i32 = arith.constant 0 : i32
    %c0_i32_0 = arith.constant 0 : i32
    %c0_i32_1 = arith.constant 0 : i32
    return %c0_i32, %c0_i32_0 : i32, i32
  }
  func.func @transform_3(%arg0: i32) -> (i32, i32) {
    %c0_i32 = arith.constant 0 : i32
    %c0_i32_0 = arith.constant 0 : i32
    %c0_i32_1 = arith.constant 0 : i32
    return %c0_i32, %c0_i32_0 : i32, i32
  }
}

module attributes {stable_mosaic.version = 11 : i64} {
  func.func @_attn_out_ln_kernel(%arg0: i32, %arg1: memref<1x16x8x4xbf16, #tpu.memory_space<vmem>>, %arg2: memref<1x16x8x4xbf16, #tpu.memory_space<vmem>>, %arg3: memref<1x16x8x4xbf16, #tpu.memory_space<vmem>>, %arg4: memref<16x4x64xbf16, #tpu.memory_space<vmem>>, %arg5: memref<1x64xf32, #tpu.memory_space<vmem>>, %arg6: memref<1x8x64xbf16, #tpu.memory_space<vmem>>, %arg7: memref<1x64xf32, #tpu.memory_space<vmem>>, %arg8: memref<1x64xf32, #tpu.memory_space<vmem>>, %arg9: memref<1x8x64xbf16, #tpu.memory_space<vmem>>) attributes {dimension_semantics = [#tpu.dimension_semantics<parallel>], iteration_bounds = array<i64: 2>, scalar_prefetch = 0 : i64, scratch_operands = 0 : i64, tpu.core_type = #tpu.core_type<tc>, window_params = [{transform_indices = @transform_0, window_bounds = array<i64: 1, 16, 8, 4>}, {transform_indices = @transform_1, window_bounds = array<i64: 1, 16, 8, 4>}, {transform_indices = @transform_2, window_bounds = array<i64: 1, 16, 8, 4>}, {pipeline_mode = #tpu.pipeline_mode<synchronous>, transform_indices = @transform_3, window_bounds = array<i64: 16, 4, 64>}, {pipeline_mode = #tpu.pipeline_mode<synchronous>, transform_indices = @transform_4, window_bounds = array<i64: 1, 64>}, {transform_indices = @transform_5, window_bounds = array<i64: 1, 8, 64>}, {pipeline_mode = #tpu.pipeline_mode<synchronous>, transform_indices = @transform_6, window_bounds = array<i64: 1, 64>}, {pipeline_mode = #tpu.pipeline_mode<synchronous>, transform_indices = @transform_7, window_bounds = array<i64: 1, 64>}, {transform_indices = @transform_8, window_bounds = array<i64: 1, 8, 64>}]} {
    %c0 = arith.constant 0 : index
    %c0_0 = arith.constant 0 : index
    %c0_1 = arith.constant 0 : index
    %c0_2 = arith.constant 0 : index
    %0 = vector.load %arg1[%c0, %c0_0, %c0_1, %c0_2] : memref<1x16x8x4xbf16, #tpu.memory_space<vmem>>, vector<1x16x8x4xbf16>
    %1 = vector.shape_cast %0 : vector<1x16x8x4xbf16> to vector<16x8x4xbf16>
    %c0_3 = arith.constant 0 : index
    %c0_4 = arith.constant 0 : index
    %c0_5 = arith.constant 0 : index
    %c0_6 = arith.constant 0 : index
    %2 = vector.load %arg2[%c0_3, %c0_4, %c0_5, %c0_6] : memref<1x16x8x4xbf16, #tpu.memory_space<vmem>>, vector<1x16x8x4xbf16>
    %3 = vector.shape_cast %2 : vector<1x16x8x4xbf16> to vector<16x8x4xbf16>
    %c0_7 = arith.constant 0 : index
    %c0_8 = arith.constant 0 : index
    %c0_9 = arith.constant 0 : index
    %c0_10 = arith.constant 0 : index
    %4 = vector.load %arg3[%c0_7, %c0_8, %c0_9, %c0_10] : memref<1x16x8x4xbf16, #tpu.memory_space<vmem>>, vector<1x16x8x4xbf16>
    %5 = vector.shape_cast %4 : vector<1x16x8x4xbf16> to vector<16x8x4xbf16>
    "tpu.trace_start"() <{level = 10 : i32, message = "hqd,hkd->hqk"}> : () -> ()
    %cst = arith.constant dense<0.000000e+00> : vector<16x8x8xf32>
    %6 = tpu.matmul %1, %3, %cst {dimension_numbers = #tpu.dot_dimension_numbers<[2], [2], [1], [1], [0, 0, 0, 1, 1, 1], [0], [0]>} : vector<16x8x4xbf16>, vector<16x8x4xbf16>, vector<16x8x8xf32> -> vector<16x8x8xf32>
    "tpu.trace_stop"() : () -> ()
    %cst_11 = arith.constant 5.000000e-01 : f32
    %7 = vector.broadcast %cst_11 : f32 to vector<16x8x8xf32>
    %8 = arith.mulf %6, %7 : vector<16x8x8xf32>
    %cst_12 = arith.constant dense<0xFF800000> : vector<16x8xf32>
    %9 = vector.multi_reduction <maximumf>, %8, %cst_12 [2] : vector<16x8x8xf32> to vector<16x8xf32>
    %10 = vector.shape_cast %9 : vector<16x8xf32> to vector<16x8x1xf32>
    %11 = vector.broadcast %10 : vector<16x8x1xf32> to vector<16x8x8xf32>
    %12 = arith.subf %8, %11 : vector<16x8x8xf32>
    %13 = math.exp %12 : vector<16x8x8xf32>
    %cst_13 = arith.constant dense<0.000000e+00> : vector<16x8xf32>
    %14 = vector.multi_reduction <add>, %13, %cst_13 [2] : vector<16x8x8xf32> to vector<16x8xf32>
    %15 = vector.shape_cast %14 : vector<16x8xf32> to vector<16x8x1xf32>
    %16 = tpu.reciprocal %15 {approx = true} : vector<16x8x1xf32> -> vector<16x8x1xf32>
    %17 = vector.broadcast %16 : vector<16x8x1xf32> to vector<16x8x8xf32>
    %18 = arith.mulf %13, %17 : vector<16x8x8xf32>
    %19 = arith.truncf %18 : vector<16x8x8xf32> to vector<16x8x8xbf16>
    "tpu.trace_start"() <{level = 10 : i32, message = "hqk,hkd->hqd"}> : () -> ()
    %cst_14 = arith.constant dense<0.000000e+00> : vector<16x8x4xf32>
    %20 = tpu.matmul %19, %5, %cst_14 {dimension_numbers = #tpu.dot_dimension_numbers<[2], [1], [1], [2], [0, 0, 0, 1, 1, 2], [0], [0]>} : vector<16x8x8xbf16>, vector<16x8x4xbf16>, vector<16x8x4xf32> -> vector<16x8x4xf32>
    "tpu.trace_stop"() : () -> ()
    %21 = arith.truncf %20 : vector<16x8x4xf32> to vector<16x8x4xbf16>
    %c0_15 = arith.constant 0 : index
    %c0_16 = arith.constant 0 : index
    %c0_17 = arith.constant 0 : index
    %22 = vector.load %arg4[%c0_15, %c0_16, %c0_17] : memref<16x4x64xbf16, #tpu.memory_space<vmem>>, vector<16x4x64xbf16>
    "tpu.trace_start"() <{level = 10 : i32, message = "hqd,hde->hqe"}> : () -> ()
    %cst_18 = arith.constant dense<0.000000e+00> : vector<16x8x64xf32>
    %23 = tpu.matmul %21, %22, %cst_18 {dimension_numbers = #tpu.dot_dimension_numbers<[2], [1], [1], [2], [0, 0, 0, 1, 1, 2], [0], [0]>} : vector<16x8x4xbf16>, vector<16x4x64xbf16>, vector<16x8x64xf32> -> vector<16x8x64xf32>
    "tpu.trace_stop"() : () -> ()
    %cst_19 = arith.constant dense<0.000000e+00> : vector<8x64xf32>
    %24 = vector.multi_reduction <add>, %23, %cst_19 [0] : vector<16x8x64xf32> to vector<8x64xf32>
    %c0_20 = arith.constant 0 : index
    %c0_21 = arith.constant 0 : index
    %25 = vector.load %arg5[%c0_20, %c0_21] : memref<1x64xf32, #tpu.memory_space<vmem>>, vector<1x64xf32>
    %26 = vector.broadcast %25 : vector<1x64xf32> to vector<8x64xf32>
    %27 = arith.addf %24, %26 : vector<8x64xf32>
    %c0_22 = arith.constant 0 : index
    %c0_23 = arith.constant 0 : index
    %c0_24 = arith.constant 0 : index
    %28 = vector.load %arg6[%c0_22, %c0_23, %c0_24] : memref<1x8x64xbf16, #tpu.memory_space<vmem>>, vector<1x8x64xbf16>
    %29 = vector.shape_cast %28 : vector<1x8x64xbf16> to vector<8x64xbf16>
    %30 = arith.extf %29 : vector<8x64xbf16> to vector<8x64xf32>
    %31 = arith.addf %27, %30 : vector<8x64xf32>
    %cst_25 = arith.constant dense<0.000000e+00> : vector<8xf32>
    %32 = vector.multi_reduction <add>, %31, %cst_25 [1] : vector<8x64xf32> to vector<8xf32>
    %33 = vector.shape_cast %32 : vector<8xf32> to vector<8x1xf32>
    %cst_26 = arith.constant 6.400000e+01 : f32
    %34 = vector.broadcast %cst_26 : f32 to vector<8x1xf32>
    %35 = arith.divf %33, %34 : vector<8x1xf32>
    %36 = vector.broadcast %35 : vector<8x1xf32> to vector<8x64xf32>
    %37 = arith.subf %31, %36 : vector<8x64xf32>
    %38 = arith.mulf %37, %37 : vector<8x64xf32>
    %cst_27 = arith.constant dense<0.000000e+00> : vector<8xf32>
    %39 = vector.multi_reduction <add>, %38, %cst_27 [1] : vector<8x64xf32> to vector<8xf32>
    %40 = vector.shape_cast %39 : vector<8xf32> to vector<8x1xf32>
    %cst_28 = arith.constant 6.400000e+01 : f32
    %41 = vector.broadcast %cst_28 : f32 to vector<8x1xf32>
    %42 = arith.divf %40, %41 : vector<8x1xf32>
    %43 = vector.broadcast %35 : vector<8x1xf32> to vector<8x64xf32>
    %44 = arith.subf %31, %43 : vector<8x64xf32>
    %cst_29 = arith.constant 9.99999974E-6 : f32
    %45 = vector.broadcast %cst_29 : f32 to vector<8x1xf32>
    %46 = arith.addf %42, %45 : vector<8x1xf32>
    %47 = math.rsqrt %46 : vector<8x1xf32>
    %48 = vector.broadcast %47 : vector<8x1xf32> to vector<8x64xf32>
    %49 = arith.mulf %44, %48 : vector<8x64xf32>
    %c0_30 = arith.constant 0 : index
    %c0_31 = arith.constant 0 : index
    %50 = vector.load %arg7[%c0_30, %c0_31] : memref<1x64xf32, #tpu.memory_space<vmem>>, vector<1x64xf32>
    %51 = vector.broadcast %50 : vector<1x64xf32> to vector<8x64xf32>
    %52 = arith.mulf %49, %51 : vector<8x64xf32>
    %c0_32 = arith.constant 0 : index
    %c0_33 = arith.constant 0 : index
    %53 = vector.load %arg8[%c0_32, %c0_33] : memref<1x64xf32, #tpu.memory_space<vmem>>, vector<1x64xf32>
    %54 = vector.broadcast %53 : vector<1x64xf32> to vector<8x64xf32>
    %55 = arith.addf %52, %54 : vector<8x64xf32>
    %56 = arith.truncf %55 : vector<8x64xf32> to vector<8x64xbf16>
    %c0_34 = arith.constant 0 : index
    %c0_35 = arith.constant 0 : index
    %c0_36 = arith.constant 0 : index
    %57 = vector.load %arg9[%c0_34, %c0_35, %c0_36] : memref<1x8x64xbf16, #tpu.memory_space<vmem>>, vector<1x8x64xbf16>
    %58 = vector.shape_cast %57 : vector<1x8x64xbf16> to vector<8x64xbf16>
    %59 = vector.shape_cast %56 : vector<8x64xbf16> to vector<1x8x64xbf16>
    tpu.vector_store %arg9[%c0_34, %c0_35, %c0_36], %59 {strides = array<i32>} : memref<1x8x64xbf16, #tpu.memory_space<vmem>>, vector<1x8x64xbf16>,
    return
  }
  func.func @transform_0(%arg0: i32) -> (i32, i32, i32, i32) {
    %c0_i32 = arith.constant 0 : i32
    %c0_i32_0 = arith.constant 0 : i32
    %c0_i32_1 = arith.constant 0 : i32
    %c0_i32_2 = arith.constant 0 : i32
    return %arg0, %c0_i32, %c0_i32_0, %c0_i32_1 : i32, i32, i32, i32
  }
  func.func @transform_1(%arg0: i32) -> (i32, i32, i32, i32) {
    %c0_i32 = arith.constant 0 : i32
    %c0_i32_0 = arith.constant 0 : i32
    %c0_i32_1 = arith.constant 0 : i32
    %c0_i32_2 = arith.constant 0 : i32
    return %arg0, %c0_i32, %c0_i32_0, %c0_i32_1 : i32, i32, i32, i32
  }
  func.func @transform_2(%arg0: i32) -> (i32, i32, i32, i32) {
    %c0_i32 = arith.constant 0 : i32
    %c0_i32_0 = arith.constant 0 : i32
    %c0_i32_1 = arith.constant 0 : i32
    %c0_i32_2 = arith.constant 0 : i32
    return %arg0, %c0_i32, %c0_i32_0, %c0_i32_1 : i32, i32, i32, i32
  }
  func.func @transform_3(%arg0: i32) -> (i32, i32, i32) {
    %c0_i32 = arith.constant 0 : i32
    %c0_i32_0 = arith.constant 0 : i32
    %c0_i32_1 = arith.constant 0 : i32
    %c0_i32_2 = arith.constant 0 : i32
    return %c0_i32, %c0_i32_0, %c0_i32_1 : i32, i32, i32
  }
  func.func @transform_4(%arg0: i32) -> (i32, i32) {
    %c0_i32 = arith.constant 0 : i32
    %c0_i32_0 = arith.constant 0 : i32
    %c0_i32_1 = arith.constant 0 : i32
    return %c0_i32, %c0_i32_0 : i32, i32
  }
  func.func @transform_5(%arg0: i32) -> (i32, i32, i32) {
    %c0_i32 = arith.constant 0 : i32
    %c0_i32_0 = arith.constant 0 : i32
    %c0_i32_1 = arith.constant 0 : i32
    return %arg0, %c0_i32, %c0_i32_0 : i32, i32, i32
  }
  func.func @transform_6(%arg0: i32) -> (i32, i32) {
    %c0_i32 = arith.constant 0 : i32
    %c0_i32_0 = arith.constant 0 : i32
    %c0_i32_1 = arith.constant 0 : i32
    return %c0_i32, %c0_i32_0 : i32, i32
  }
  func.func @transform_7(%arg0: i32) -> (i32, i32) {
    %c0_i32 = arith.constant 0 : i32
    %c0_i32_0 = arith.constant 0 : i32
    %c0_i32_1 = arith.constant 0 : i32
    return %c0_i32, %c0_i32_0 : i32, i32
  }
  func.func @transform_8(%arg0: i32) -> (i32, i32, i32) {
    %c0_i32 = arith.constant 0 : i32
    %c0_i32_0 = arith.constant 0 : i32
    %c0_i32_1 = arith.constant 0 : i32
    return %arg0, %c0_i32, %c0_i32_0 : i32, i32, i32
  }
}

module attributes {stable_mosaic.version = 11 : i64} {
  func.func @_linear_kernel(%arg0: i32, %arg1: memref<16x64xbf16, #tpu.memory_space<vmem>>, %arg2: memref<64x64xbf16, #tpu.memory_space<vmem>>, %arg3: memref<1x64xf32, #tpu.memory_space<vmem>>, %arg4: memref<16x64xbf16, #tpu.memory_space<vmem>>) attributes {dimension_semantics = [#tpu.dimension_semantics<arbitrary>], iteration_bounds = array<i64: 1>, scalar_prefetch = 0 : i64, scratch_operands = 0 : i64, tpu.core_type = #tpu.core_type<tc>, window_params = [{pipeline_mode = #tpu.pipeline_mode<synchronous>, transform_indices = @transform_0, window_bounds = array<i64: 16, 64>}, {pipeline_mode = #tpu.pipeline_mode<synchronous>, transform_indices = @transform_1, window_bounds = array<i64: 64, 64>}, {pipeline_mode = #tpu.pipeline_mode<synchronous>, transform_indices = @transform_2, window_bounds = array<i64: 1, 64>}, {pipeline_mode = #tpu.pipeline_mode<synchronous>, transform_indices = @transform_3, window_bounds = array<i64: 16, 64>}]} {
    %c0 = arith.constant 0 : index
    %c0_0 = arith.constant 0 : index
    %0 = vector.load %arg1[%c0, %c0_0] : memref<16x64xbf16, #tpu.memory_space<vmem>>, vector<16x64xbf16>
    %c0_1 = arith.constant 0 : index
    %c0_2 = arith.constant 0 : index
    %1 = vector.load %arg2[%c0_1, %c0_2] : memref<64x64xbf16, #tpu.memory_space<vmem>>, vector<64x64xbf16>
    %cst = arith.constant dense<0.000000e+00> : vector<16x64xf32>
    %2 = tpu.matmul %0, %1, %cst {dimension_numbers = #tpu.dot_dimension_numbers<[1], [0], [0], [1], [0, 0, 1, 1], [], []>} : vector<16x64xbf16>, vector<64x64xbf16>, vector<16x64xf32> -> vector<16x64xf32>
    %c0_3 = arith.constant 0 : index
    %c0_4 = arith.constant 0 : index
    %3 = vector.load %arg3[%c0_3, %c0_4] : memref<1x64xf32, #tpu.memory_space<vmem>>, vector<1x64xf32>
    %4 = vector.broadcast %3 : vector<1x64xf32> to vector<16x64xf32>
    %5 = arith.addf %2, %4 : vector<16x64xf32>
    %6 = arith.truncf %5 : vector<16x64xf32> to vector<16x64xbf16>
    %c0_5 = arith.constant 0 : index
    %c0_6 = arith.constant 0 : index
    %7 = vector.load %arg4[%c0_5, %c0_6] : memref<16x64xbf16, #tpu.memory_space<vmem>>, vector<16x64xbf16>
    tpu.vector_store %arg4[%c0_5, %c0_6], %6 {strides = array<i32>} : memref<16x64xbf16, #tpu.memory_space<vmem>>, vector<16x64xbf16>,
    return
  }
  func.func @transform_0(%arg0: i32) -> (i32, i32) {
    %c0_i32 = arith.constant 0 : i32
    %c0_i32_0 = arith.constant 0 : i32
    %c0_i32_1 = arith.constant 0 : i32
    return %c0_i32, %c0_i32_0 : i32, i32
  }
  func.func @transform_1(%arg0: i32) -> (i32, i32) {
    %c0_i32 = arith.constant 0 : i32
    %c0_i32_0 = arith.constant 0 : i32
    %c0_i32_1 = arith.constant 0 : i32
    return %c0_i32, %c0_i32_0 : i32, i32
  }
  func.func @transform_2(%arg0: i32) -> (i32, i32) {
    %c0_i32 = arith.constant 0 : i32
    %c0_i32_0 = arith.constant 0 : i32
    %c0_i32_1 = arith.constant 0 : i32
    return %c0_i32, %c0_i32_0 : i32, i32
  }
  func.func @transform_3(%arg0: i32) -> (i32, i32) {
    %c0_i32 = arith.constant 0 : i32
    %c0_i32_0 = arith.constant 0 : i32
    %c0_i32_1 = arith.constant 0 : i32
    return %c0_i32, %c0_i32_0 : i32, i32
  }
}

module attributes {stable_mosaic.version = 11 : i64} {
  func.func @_ln_kernel(%arg0: i32, %arg1: memref<16x64xbf16, #tpu.memory_space<vmem>>, %arg2: memref<1x64xf32, #tpu.memory_space<vmem>>, %arg3: memref<1x64xf32, #tpu.memory_space<vmem>>, %arg4: memref<16x64xbf16, #tpu.memory_space<vmem>>) attributes {dimension_semantics = [#tpu.dimension_semantics<arbitrary>], iteration_bounds = array<i64: 1>, scalar_prefetch = 0 : i64, scratch_operands = 0 : i64, tpu.core_type = #tpu.core_type<tc>, window_params = [{pipeline_mode = #tpu.pipeline_mode<synchronous>, transform_indices = @transform_0, window_bounds = array<i64: 16, 64>}, {pipeline_mode = #tpu.pipeline_mode<synchronous>, transform_indices = @transform_1, window_bounds = array<i64: 1, 64>}, {pipeline_mode = #tpu.pipeline_mode<synchronous>, transform_indices = @transform_2, window_bounds = array<i64: 1, 64>}, {pipeline_mode = #tpu.pipeline_mode<synchronous>, transform_indices = @transform_3, window_bounds = array<i64: 16, 64>}]} {
    %c0 = arith.constant 0 : index
    %c0_0 = arith.constant 0 : index
    %0 = vector.load %arg1[%c0, %c0_0] : memref<16x64xbf16, #tpu.memory_space<vmem>>, vector<16x64xbf16>
    %1 = arith.extf %0 : vector<16x64xbf16> to vector<16x64xf32>
    %cst = arith.constant dense<0.000000e+00> : vector<16xf32>
    %2 = vector.multi_reduction <add>, %1, %cst [1] : vector<16x64xf32> to vector<16xf32>
    %3 = vector.shape_cast %2 : vector<16xf32> to vector<16x1xf32>
    %cst_1 = arith.constant 6.400000e+01 : f32
    %4 = vector.broadcast %cst_1 : f32 to vector<16x1xf32>
    %5 = arith.divf %3, %4 : vector<16x1xf32>
    %6 = vector.broadcast %5 : vector<16x1xf32> to vector<16x64xf32>
    %7 = arith.subf %1, %6 : vector<16x64xf32>
    %8 = arith.mulf %7, %7 : vector<16x64xf32>
    %cst_2 = arith.constant dense<0.000000e+00> : vector<16xf32>
    %9 = vector.multi_reduction <add>, %8, %cst_2 [1] : vector<16x64xf32> to vector<16xf32>
    %10 = vector.shape_cast %9 : vector<16xf32> to vector<16x1xf32>
    %cst_3 = arith.constant 6.400000e+01 : f32
    %11 = vector.broadcast %cst_3 : f32 to vector<16x1xf32>
    %12 = arith.divf %10, %11 : vector<16x1xf32>
    %13 = vector.broadcast %5 : vector<16x1xf32> to vector<16x64xf32>
    %14 = arith.subf %1, %13 : vector<16x64xf32>
    %cst_4 = arith.constant 9.99999974E-6 : f32
    %15 = vector.broadcast %cst_4 : f32 to vector<16x1xf32>
    %16 = arith.addf %12, %15 : vector<16x1xf32>
    %17 = math.rsqrt %16 : vector<16x1xf32>
    %18 = vector.broadcast %17 : vector<16x1xf32> to vector<16x64xf32>
    %19 = arith.mulf %14, %18 : vector<16x64xf32>
    %c0_5 = arith.constant 0 : index
    %c0_6 = arith.constant 0 : index
    %20 = vector.load %arg2[%c0_5, %c0_6] : memref<1x64xf32, #tpu.memory_space<vmem>>, vector<1x64xf32>
    %21 = vector.broadcast %20 : vector<1x64xf32> to vector<16x64xf32>
    %22 = arith.mulf %19, %21 : vector<16x64xf32>
    %c0_7 = arith.constant 0 : index
    %c0_8 = arith.constant 0 : index
    %23 = vector.load %arg3[%c0_7, %c0_8] : memref<1x64xf32, #tpu.memory_space<vmem>>, vector<1x64xf32>
    %24 = vector.broadcast %23 : vector<1x64xf32> to vector<16x64xf32>
    %25 = arith.addf %22, %24 : vector<16x64xf32>
    %26 = arith.truncf %25 : vector<16x64xf32> to vector<16x64xbf16>
    %c0_9 = arith.constant 0 : index
    %c0_10 = arith.constant 0 : index
    %27 = vector.load %arg4[%c0_9, %c0_10] : memref<16x64xbf16, #tpu.memory_space<vmem>>, vector<16x64xbf16>
    tpu.vector_store %arg4[%c0_9, %c0_10], %26 {strides = array<i32>} : memref<16x64xbf16, #tpu.memory_space<vmem>>, vector<16x64xbf16>,
    return
  }
  func.func @transform_0(%arg0: i32) -> (i32, i32) {
    %c0_i32 = arith.constant 0 : i32
    %c0_i32_0 = arith.constant 0 : i32
    %c0_i32_1 = arith.constant 0 : i32
    return %c0_i32, %c0_i32_0 : i32, i32
  }
  func.func @transform_1(%arg0: i32) -> (i32, i32) {
    %c0_i32 = arith.constant 0 : i32
    %c0_i32_0 = arith.constant 0 : i32
    %c0_i32_1 = arith.constant 0 : i32
    return %c0_i32, %c0_i32_0 : i32, i32
  }
  func.func @transform_2(%arg0: i32) -> (i32, i32) {
    %c0_i32 = arith.constant 0 : i32
    %c0_i32_0 = arith.constant 0 : i32
    %c0_i32_1 = arith.constant 0 : i32
    return %c0_i32, %c0_i32_0 : i32, i32
  }
  func.func @transform_3(%arg0: i32) -> (i32, i32) {
    %c0_i32 = arith.constant 0 : i32
    %c0_i32_0 = arith.constant 0 : i32
    %c0_i32_1 = arith.constant 0 : i32
    return %c0_i32, %c0_i32_0 : i32, i32
  }
}

module attributes {stable_mosaic.version = 11 : i64} {
  func.func @_ffn_add_ln_kernel(%arg0: i32, %arg1: memref<16x64xbf16, #tpu.memory_space<vmem>>, %arg2: memref<64x128xbf16, #tpu.memory_space<vmem>>, %arg3: memref<1x128xf32, #tpu.memory_space<vmem>>, %arg4: memref<128x64xbf16, #tpu.memory_space<vmem>>, %arg5: memref<1x64xf32, #tpu.memory_space<vmem>>, %arg6: memref<1x64xf32, #tpu.memory_space<vmem>>, %arg7: memref<1x64xf32, #tpu.memory_space<vmem>>, %arg8: memref<16x64xbf16, #tpu.memory_space<vmem>>) attributes {dimension_semantics = [#tpu.dimension_semantics<arbitrary>], iteration_bounds = array<i64: 1>, scalar_prefetch = 0 : i64, scratch_operands = 0 : i64, tpu.core_type = #tpu.core_type<tc>, window_params = [{pipeline_mode = #tpu.pipeline_mode<synchronous>, transform_indices = @transform_0, window_bounds = array<i64: 16, 64>}, {pipeline_mode = #tpu.pipeline_mode<synchronous>, transform_indices = @transform_1, window_bounds = array<i64: 64, 128>}, {pipeline_mode = #tpu.pipeline_mode<synchronous>, transform_indices = @transform_2, window_bounds = array<i64: 1, 128>}, {pipeline_mode = #tpu.pipeline_mode<synchronous>, transform_indices = @transform_3, window_bounds = array<i64: 128, 64>}, {pipeline_mode = #tpu.pipeline_mode<synchronous>, transform_indices = @transform_4, window_bounds = array<i64: 1, 64>}, {pipeline_mode = #tpu.pipeline_mode<synchronous>, transform_indices = @transform_5, window_bounds = array<i64: 1, 64>}, {pipeline_mode = #tpu.pipeline_mode<synchronous>, transform_indices = @transform_6, window_bounds = array<i64: 1, 64>}, {pipeline_mode = #tpu.pipeline_mode<synchronous>, transform_indices = @transform_7, window_bounds = array<i64: 16, 64>}]} {
    %c0 = arith.constant 0 : index
    %c0_0 = arith.constant 0 : index
    %0 = vector.load %arg1[%c0, %c0_0] : memref<16x64xbf16, #tpu.memory_space<vmem>>, vector<16x64xbf16>
    %c0_1 = arith.constant 0 : index
    %c0_2 = arith.constant 0 : index
    %1 = vector.load %arg2[%c0_1, %c0_2] : memref<64x128xbf16, #tpu.memory_space<vmem>>, vector<64x128xbf16>
    %cst = arith.constant dense<0.000000e+00> : vector<16x128xf32>
    %2 = tpu.matmul %0, %1, %cst {dimension_numbers = #tpu.dot_dimension_numbers<[1], [0], [0], [1], [0, 0, 1, 1], [], []>} : vector<16x64xbf16>, vector<64x128xbf16>, vector<16x128xf32> -> vector<16x128xf32>
    %c0_3 = arith.constant 0 : index
    %c0_4 = arith.constant 0 : index
    %3 = vector.load %arg3[%c0_3, %c0_4] : memref<1x128xf32, #tpu.memory_space<vmem>>, vector<1x128xf32>
    %4 = vector.broadcast %3 : vector<1x128xf32> to vector<16x128xf32>
    %5 = arith.addf %2, %4 : vector<16x128xf32>
    %cst_5 = arith.constant 0.000000e+00 : f32
    %6 = vector.broadcast %cst_5 : f32 to vector<16x128xf32>
    %7 = arith.maximumf %5, %6 : vector<16x128xf32>
    %8 = arith.truncf %7 : vector<16x128xf32> to vector<16x128xbf16>
    %c0_6 = arith.constant 0 : index
    %c0_7 = arith.constant 0 : index
    %9 = vector.load %arg4[%c0_6, %c0_7] : memref<128x64xbf16, #tpu.memory_space<vmem>>, vector<128x64xbf16>
    %cst_8 = arith.constant dense<0.000000e+00> : vector<16x64xf32>
    %10 = tpu.matmul %8, %9, %cst_8 {dimension_numbers = #tpu.dot_dimension_numbers<[1], [0], [0], [1], [0, 0, 1, 1], [], []>} : vector<16x128xbf16>, vector<128x64xbf16>, vector<16x64xf32> -> vector<16x64xf32>
    %c0_9 = arith.constant 0 : index
    %c0_10 = arith.constant 0 : index
    %11 = vector.load %arg5[%c0_9, %c0_10] : memref<1x64xf32, #tpu.memory_space<vmem>>, vector<1x64xf32>
    %12 = vector.broadcast %11 : vector<1x64xf32> to vector<16x64xf32>
    %13 = arith.addf %10, %12 : vector<16x64xf32>
    %c0_11 = arith.constant 0 : index
    %c0_12 = arith.constant 0 : index
    %14 = vector.load %arg1[%c0_11, %c0_12] : memref<16x64xbf16, #tpu.memory_space<vmem>>, vector<16x64xbf16>
    %15 = arith.extf %14 : vector<16x64xbf16> to vector<16x64xf32>
    %16 = arith.addf %13, %15 : vector<16x64xf32>
    %cst_13 = arith.constant dense<0.000000e+00> : vector<16xf32>
    %17 = vector.multi_reduction <add>, %16, %cst_13 [1] : vector<16x64xf32> to vector<16xf32>
    %18 = vector.shape_cast %17 : vector<16xf32> to vector<16x1xf32>
    %cst_14 = arith.constant 6.400000e+01 : f32
    %19 = vector.broadcast %cst_14 : f32 to vector<16x1xf32>
    %20 = arith.divf %18, %19 : vector<16x1xf32>
    %21 = vector.broadcast %20 : vector<16x1xf32> to vector<16x64xf32>
    %22 = arith.subf %16, %21 : vector<16x64xf32>
    %23 = arith.mulf %22, %22 : vector<16x64xf32>
    %cst_15 = arith.constant dense<0.000000e+00> : vector<16xf32>
    %24 = vector.multi_reduction <add>, %23, %cst_15 [1] : vector<16x64xf32> to vector<16xf32>
    %25 = vector.shape_cast %24 : vector<16xf32> to vector<16x1xf32>
    %cst_16 = arith.constant 6.400000e+01 : f32
    %26 = vector.broadcast %cst_16 : f32 to vector<16x1xf32>
    %27 = arith.divf %25, %26 : vector<16x1xf32>
    %28 = vector.broadcast %20 : vector<16x1xf32> to vector<16x64xf32>
    %29 = arith.subf %16, %28 : vector<16x64xf32>
    %cst_17 = arith.constant 9.99999974E-6 : f32
    %30 = vector.broadcast %cst_17 : f32 to vector<16x1xf32>
    %31 = arith.addf %27, %30 : vector<16x1xf32>
    %32 = math.rsqrt %31 : vector<16x1xf32>
    %33 = vector.broadcast %32 : vector<16x1xf32> to vector<16x64xf32>
    %34 = arith.mulf %29, %33 : vector<16x64xf32>
    %c0_18 = arith.constant 0 : index
    %c0_19 = arith.constant 0 : index
    %35 = vector.load %arg6[%c0_18, %c0_19] : memref<1x64xf32, #tpu.memory_space<vmem>>, vector<1x64xf32>
    %36 = vector.broadcast %35 : vector<1x64xf32> to vector<16x64xf32>
    %37 = arith.mulf %34, %36 : vector<16x64xf32>
    %c0_20 = arith.constant 0 : index
    %c0_21 = arith.constant 0 : index
    %38 = vector.load %arg7[%c0_20, %c0_21] : memref<1x64xf32, #tpu.memory_space<vmem>>, vector<1x64xf32>
    %39 = vector.broadcast %38 : vector<1x64xf32> to vector<16x64xf32>
    %40 = arith.addf %37, %39 : vector<16x64xf32>
    %41 = arith.truncf %40 : vector<16x64xf32> to vector<16x64xbf16>
    %c0_22 = arith.constant 0 : index
    %c0_23 = arith.constant 0 : index
    %42 = vector.load %arg8[%c0_22, %c0_23] : memref<16x64xbf16, #tpu.memory_space<vmem>>, vector<16x64xbf16>
    tpu.vector_store %arg8[%c0_22, %c0_23], %41 {strides = array<i32>} : memref<16x64xbf16, #tpu.memory_space<vmem>>, vector<16x64xbf16>,
    return
  }
  func.func @transform_0(%arg0: i32) -> (i32, i32) {
    %c0_i32 = arith.constant 0 : i32
    %c0_i32_0 = arith.constant 0 : i32
    %c0_i32_1 = arith.constant 0 : i32
    return %c0_i32, %c0_i32_0 : i32, i32
  }
  func.func @transform_1(%arg0: i32) -> (i32, i32) {
    %c0_i32 = arith.constant 0 : i32
    %c0_i32_0 = arith.constant 0 : i32
    %c0_i32_1 = arith.constant 0 : i32
    return %c0_i32, %c0_i32_0 : i32, i32
  }
  func.func @transform_2(%arg0: i32) -> (i32, i32) {
    %c0_i32 = arith.constant 0 : i32
    %c0_i32_0 = arith.constant 0 : i32
    %c0_i32_1 = arith.constant 0 : i32
    return %c0_i32, %c0_i32_0 : i32, i32
  }
  func.func @transform_3(%arg0: i32) -> (i32, i32) {
    %c0_i32 = arith.constant 0 : i32
    %c0_i32_0 = arith.constant 0 : i32
    %c0_i32_1 = arith.constant 0 : i32
    return %c0_i32, %c0_i32_0 : i32, i32
  }
  func.func @transform_4(%arg0: i32) -> (i32, i32) {
    %c0_i32 = arith.constant 0 : i32
    %c0_i32_0 = arith.constant 0 : i32
    %c0_i32_1 = arith.constant 0 : i32
    return %c0_i32, %c0_i32_0 : i32, i32
  }
  func.func @transform_5(%arg0: i32) -> (i32, i32) {
    %c0_i32 = arith.constant 0 : i32
    %c0_i32_0 = arith.constant 0 : i32
    %c0_i32_1 = arith.constant 0 : i32
    return %c0_i32, %c0_i32_0 : i32, i32
  }
  func.func @transform_6(%arg0: i32) -> (i32, i32) {
    %c0_i32 = arith.constant 0 : i32
    %c0_i32_0 = arith.constant 0 : i32
    %c0_i32_1 = arith.constant 0 : i32
    return %c0_i32, %c0_i32_0 : i32, i32
  }
  func.func @transform_7(%arg0: i32) -> (i32, i32) {
    %c0_i32 = arith.constant 0 : i32
    %c0_i32_0 = arith.constant 0 : i32
    %c0_i32_1 = arith.constant 0 : i32
    return %c0_i32, %c0_i32_0 : i32, i32
  }
}

module attributes {stable_mosaic.version = 11 : i64} {
  func.func @_linear_kernel(%arg0: i32, %arg1: memref<16x64xbf16, #tpu.memory_space<vmem>>, %arg2: memref<64x128xbf16, #tpu.memory_space<vmem>>, %arg3: memref<1x128xf32, #tpu.memory_space<vmem>>, %arg4: memref<16x128xbf16, #tpu.memory_space<vmem>>) attributes {dimension_semantics = [#tpu.dimension_semantics<arbitrary>], iteration_bounds = array<i64: 1>, scalar_prefetch = 0 : i64, scratch_operands = 0 : i64, tpu.core_type = #tpu.core_type<tc>, window_params = [{pipeline_mode = #tpu.pipeline_mode<synchronous>, transform_indices = @transform_0, window_bounds = array<i64: 16, 64>}, {pipeline_mode = #tpu.pipeline_mode<synchronous>, transform_indices = @transform_1, window_bounds = array<i64: 64, 128>}, {pipeline_mode = #tpu.pipeline_mode<synchronous>, transform_indices = @transform_2, window_bounds = array<i64: 1, 128>}, {pipeline_mode = #tpu.pipeline_mode<synchronous>, transform_indices = @transform_3, window_bounds = array<i64: 16, 128>}]} {
    %c0 = arith.constant 0 : index
    %c0_0 = arith.constant 0 : index
    %0 = vector.load %arg1[%c0, %c0_0] : memref<16x64xbf16, #tpu.memory_space<vmem>>, vector<16x64xbf16>
    %c0_1 = arith.constant 0 : index
    %c0_2 = arith.constant 0 : index
    %1 = vector.load %arg2[%c0_1, %c0_2] : memref<64x128xbf16, #tpu.memory_space<vmem>>, vector<64x128xbf16>
    %cst = arith.constant dense<0.000000e+00> : vector<16x128xf32>
    %2 = tpu.matmul %0, %1, %cst {dimension_numbers = #tpu.dot_dimension_numbers<[1], [0], [0], [1], [0, 0, 1, 1], [], []>} : vector<16x64xbf16>, vector<64x128xbf16>, vector<16x128xf32> -> vector<16x128xf32>
    %c0_3 = arith.constant 0 : index
    %c0_4 = arith.constant 0 : index
    %3 = vector.load %arg3[%c0_3, %c0_4] : memref<1x128xf32, #tpu.memory_space<vmem>>, vector<1x128xf32>
    %4 = vector.broadcast %3 : vector<1x128xf32> to vector<16x128xf32>
    %5 = arith.addf %2, %4 : vector<16x128xf32>
    %6 = arith.truncf %5 : vector<16x128xf32> to vector<16x128xbf16>
    %c0_5 = arith.constant 0 : index
    %c0_6 = arith.constant 0 : index
    %7 = vector.load %arg4[%c0_5, %c0_6] : memref<16x128xbf16, #tpu.memory_space<vmem>>, vector<16x128xbf16>
    tpu.vector_store %arg4[%c0_5, %c0_6], %6 {strides = array<i32>} : memref<16x128xbf16, #tpu.memory_space<vmem>>, vector<16x128xbf16>,
    return
  }
  func.func @transform_0(%arg0: i32) -> (i32, i32) {
    %c0_i32 = arith.constant 0 : i32
    %c0_i32_0 = arith.constant 0 : i32
    %c0_i32_1 = arith.constant 0 : i32
    return %c0_i32, %c0_i32_0 : i32, i32
  }
  func.func @transform_1(%arg0: i32) -> (i32, i32) {
    %c0_i32 = arith.constant 0 : i32
    %c0_i32_0 = arith.constant 0 : i32
    %c0_i32_1 = arith.constant 0 : i32
    return %c0_i32, %c0_i32_0 : i32, i32
  }
  func.func @transform_2(%arg0: i32) -> (i32, i32) {
    %c0_i32 = arith.constant 0 : i32
    %c0_i32_0 = arith.constant 0 : i32
    %c0_i32_1 = arith.constant 0 : i32
    return %c0_i32, %c0_i32_0 : i32, i32
  }
  func.func @transform_3(%arg0: i32) -> (i32, i32) {
    %c0_i32 = arith.constant 0 : i32
    %c0_i32_0 = arith.constant 0 : i32
    %c0_i32_1 = arith.constant 0 : i32
    return %c0_i32, %c0_i32_0 : i32, i32
  }
}

module attributes {stable_mosaic.version = 11 : i64} {
  func.func @_linear_kernel(%arg0: i32, %arg1: memref<16x64xbf16, #tpu.memory_space<vmem>>, %arg2: memref<64x32xbf16, #tpu.memory_space<vmem>>, %arg3: memref<1x32xf32, #tpu.memory_space<vmem>>, %arg4: memref<16x32xf32, #tpu.memory_space<vmem>>) attributes {dimension_semantics = [#tpu.dimension_semantics<arbitrary>], iteration_bounds = array<i64: 1>, scalar_prefetch = 0 : i64, scratch_operands = 0 : i64, tpu.core_type = #tpu.core_type<tc>, window_params = [{pipeline_mode = #tpu.pipeline_mode<synchronous>, transform_indices = @transform_0, window_bounds = array<i64: 16, 64>}, {pipeline_mode = #tpu.pipeline_mode<synchronous>, transform_indices = @transform_1, window_bounds = array<i64: 64, 32>}, {pipeline_mode = #tpu.pipeline_mode<synchronous>, transform_indices = @transform_2, window_bounds = array<i64: 1, 32>}, {pipeline_mode = #tpu.pipeline_mode<synchronous>, transform_indices = @transform_3, window_bounds = array<i64: 16, 32>}]} {
    %c0 = arith.constant 0 : index
    %c0_0 = arith.constant 0 : index
    %0 = vector.load %arg1[%c0, %c0_0] : memref<16x64xbf16, #tpu.memory_space<vmem>>, vector<16x64xbf16>
    %c0_1 = arith.constant 0 : index
    %c0_2 = arith.constant 0 : index
    %1 = vector.load %arg2[%c0_1, %c0_2] : memref<64x32xbf16, #tpu.memory_space<vmem>>, vector<64x32xbf16>
    %cst = arith.constant dense<0.000000e+00> : vector<16x32xf32>
    %2 = tpu.matmul %0, %1, %cst {dimension_numbers = #tpu.dot_dimension_numbers<[1], [0], [0], [1], [0, 0, 1, 1], [], []>} : vector<16x64xbf16>, vector<64x32xbf16>, vector<16x32xf32> -> vector<16x32xf32>
    %c0_3 = arith.constant 0 : index
    %c0_4 = arith.constant 0 : index
    %3 = vector.load %arg3[%c0_3, %c0_4] : memref<1x32xf32, #tpu.memory_space<vmem>>, vector<1x32xf32>
    %4 = vector.broadcast %3 : vector<1x32xf32> to vector<16x32xf32>
    %5 = arith.addf %2, %4 : vector<16x32xf32>
    %c0_5 = arith.constant 0 : index
    %c0_6 = arith.constant 0 : index
    %6 = vector.load %arg4[%c0_5, %c0_6] : memref<16x32xf32, #tpu.memory_space<vmem>>, vector<16x32xf32>
    tpu.vector_store %arg4[%c0_5, %c0_6], %5 {strides = array<i32>} : memref<16x32xf32, #tpu.memory_space<vmem>>, vector<16x32xf32>,
    return
  }
  func.func @transform_0(%arg0: i32) -> (i32, i32) {
    %c0_i32 = arith.constant 0 : i32
    %c0_i32_0 = arith.constant 0 : i32
    %c0_i32_1 = arith.constant 0 : i32
    return %c0_i32, %c0_i32_0 : i32, i32
  }
  func.func @transform_1(%arg0: i32) -> (i32, i32) {
    %c0_i32 = arith.constant 0 : i32
    %c0_i32_0 = arith.constant 0 : i32
    %c0_i32_1 = arith.constant 0 : i32
    return %c0_i32, %c0_i32_0 : i32, i32
  }
  func.func @transform_2(%arg0: i32) -> (i32, i32) {
    %c0_i32 = arith.constant 0 : i32
    %c0_i32_0 = arith.constant 0 : i32
    %c0_i32_1 = arith.constant 0 : i32
    return %c0_i32, %c0_i32_0 : i32, i32
  }
  func.func @transform_3(%arg0: i32) -> (i32, i32) {
    %c0_i32 = arith.constant 0 : i32
    %c0_i32_0 = arith.constant 0 : i32
    %c0_i32_1 = arith.constant 0 : i32
    return %c0_i32, %c0_i32_0 : i32, i32
  }
}

</mosaic_0001>

<bundles_post_ra>
// kernel: transformer_forward.28
= control target key start
LH: loop header
LB: loop body
LE: loop exit
PB: predicated region body
PF: predicated region fallthrough
CT: control target
= control target key end

     0   :  { %v178_v1 = vmov 0   ;;  %vm82_vm0 = vcmask 523264   ;;  %v27_v10 = vlaneseq  ;;  %vm141_vm1 = vcmask 1043456   ;;  %s235_s1 = inlined_call_operand.vmem [shape: bf16[64,192], index: 1, kind: input, shape index: {}]   ;;  %s236_s0 = inlined_call_operand.vmem [shape: bf16[16,64], index: 0, kind: input, shape index: {}]   ;;  %s237_s2 = inlined_call_operand.vmem [shape: f32[1,192], index: 2, kind: input, shape index: {}]   ;;  %s238_s3 = inlined_call_operand.vmem [shape: bf16[16,192], index: 3, kind: output, shape index: {}]  }
   0x1   :  { %v165_v0 = vld [vmem:[%s235_s1 + $0x4] ss:$8 sps:$4 sm:$0xff]   ;;  %118 = vmatprep.mubr.bf16.mxu0 %v178_v1  ;;  %v167_v2 = vld [vmem:[%s235_s1] ss:$8 sps:$4 sm:$0xff]   ;;  %v168_v3 = vld [vmem:[%s235_s1 + $0x14] ss:$8 sps:$4 sm:$0xff]  }
   0x2   :  { %86 = vmatprep.subr.bf16.mxu0 %v165_v0  ;;  %v170_v4 = vld [vmem:[%s235_s1 + $0x10] ss:$8 sps:$4 sm:$0xff]   ;;  %v171_v5 = vld [vmem:[%s235_s1 + $0x24] ss:$8 sps:$4 sm:$0xff]   ;;  %v173_v6 = vld [vmem:[%s235_s1 + $0x20] ss:$8 sps:$4 sm:$0xff]  }
   0x3   :  { %87 = vmatpush1.bf16.msra.mxu0 %v167_v2  ;;  %v174_v7 = vld [vmem:[%s235_s1 + $0x34] ss:$8 sps:$4 sm:$0xff]   ;;  %v176_v8 = vld [vmem:[%s235_s1 + $0x30] ss:$8 sps:$4 sm:$0xff]   ;;  %v177_v9 = vld [vmem:[%s236_s0] sm:$0xff]   ;;  %v28_v11 = vshrl.u32 %v27_v10, 7 }
   0x4   :  { %88 = vmatprep.subr.bf16.mxu0 %v168_v3  ;;  %v25_v13 = vld [vmem:[%s237_s2] sm:$0x3]  ;;  %vm142_vm2 = vcmask 523268  }
   0x5   :  { %v29_v12 = vsub.s32 0, %v28_v11  ;;  %v33_v14 = vsub.s32 1, %v28_v11  ;;  %vm143_vm3 = vmor %vm142_vm2, %vm141_vm1 }
   0x7   :  { %89 = vmatpush1.bf16.msra.mxu0 %v170_v4  ;;  %v30_v15 = vrot.slane %v25_v13, %v29_v12  ;;  %v34_v16 = vrot.slane %v25_v13, %v33_v14 }
   0x8   :  { %90 = vmatprep.subr.bf16.mxu0 %v171_v5 }
   0xb   :  { %91 = vmatpush1.bf16.msra.mxu0 %v173_v6 }
   0xc   :  { %92 = vmatprep.subr.bf16.mxu0 %v174_v7 }
   0xf   :  { %93 = vmatpush1.bf16.msra.mxu0 %v176_v8 }
  0x12   :  { %159 = vmatmul.mubr.msk.bf16.vlgmr.msra.gmra.mrb[0].mxu0 %vm82_vm0, %v177_v9 }
  0xe5   :  { %v120_v17 = vpop.f32.mrb[0].mxu0 }
  0xe6   :  { %v121_v18 = vadd.f32 %v120_v17, %v30_v15  ;;  %v122_v19 = vpop.f32.mrb[1].mxu0 }
  0xe7   :  { %v123_v20 = vadd.f32 %v122_v19, %v34_v16  ;;  %v124_v21 = vpop.f32.mrb[2].mxu0 }
  0xe8   :  { %v125_v22 = vadd.f32 %v124_v21, %v30_v15  ;;  %v126_v23 = vpop.f32.mrb[3].mxu0 }
  0xe9   :  { %v162_v24 = vpack.c.bf16 %v123_v20, %v121_v18  ;;  %v127_v25 = vadd.f32 %v126_v23, %v34_v16 }
  0xeb   :  { %144 = vst.msk [vmem:[%s238_s3] sm:$0xff] %vm143_vm3, %v162_v24  ;;  %v163_v26 = vpack.c.bf16 %v127_v25, %v125_v22 }
  0xed   :  { %145 = vst.msk [vmem:[%s238_s3 + $0x8] sm:$0xff] %vm143_vm3, %v163_v26 }

// kernel: transformer_forward.30
= control target key start
LH: loop header
LB: loop body
LE: loop exit
PB: predicated region body
PF: predicated region fallthrough
CT: control target
= control target key end

     0   :  { %v156_v0 = vmov 0.0   ;;  %vm157_vm0 = vmmov 0   ;;  %vm61_vm1 = vcmask 523264   ;;  %vm114_vm2 = vcmask 519168   ;;  %s202_s1 = inlined_call_operand.vmem [shape: bf16[64,64], index: 1, kind: input, shape index: {}]   ;;  %s203_s0 = inlined_call_operand.vmem [shape: bf16[16,64], index: 0, kind: input, shape index: {}]   ;;  %s204_s2 = inlined_call_operand.vmem [shape: f32[1,64], index: 2, kind: input, shape index: {}]   ;;  %s205_s3 = inlined_call_operand.vmem [shape: bf16[16,64], index: 3, kind: output, shape index: {}]  }
   0x1   :  { %137 = vmatprep.subr.bf16.mxu0 %v156_v0  ;;  %v151_v1 = vld [vmem:[%s202_s1] sm:$0xff]   ;;  %145 = vmatprep.mubr.msk.bf16.mxu0 %vm157_vm0, %v156_v0  ;;  %v152_v2 = vld [vmem:[%s202_s1 + $0x8] sm:$0xff]   ;;  %v153_v3 = vld [vmem:[%s202_s1 + $0x10] sm:$0xff]  }
   0x2   :  { %138 = vmatpush3.bf16.msra.mxu0 %v151_v1  ;;  %v154_v4 = vld [vmem:[%s202_s1 + $0x18] sm:$0xff]   ;;  %v155_v5 = vld [vmem:[%s203_s0] sm:$0xff]  }
   0x3   :  { %139 = vmatprep.subr.bf16.mxu0 %v156_v0  ;;  %v121_v6 = vld [vmem:[%s204_s2] ss:$0 sm:$0xff] }
   0x6   :  { %140 = vmatpush3.bf16.msra.mxu0 %v152_v2 }
   0x7   :  { %141 = vmatprep.subr.bf16.mxu0 %v156_v0 }
   0xa   :  { %142 = vmatpush3.bf16.msra.mxu0 %v153_v3 }
   0xb   :  { %143 = vmatprep.subr.bf16.mxu0 %v156_v0 }
   0xe   :  { %144 = vmatpush3.bf16.msra.mxu0 %v154_v4 }
  0x11   :  { %146 = vmatmul.mubr.msk.bf16.vlgmr.msra.gmra.mrb[0].mxu0 %vm61_vm1, %v155_v5 }
  0xe4   :  { %v99_v7 = vpop.f32.mrb[0].mxu0 }
  0xe5   :  { %v100_v8 = vadd.f32 %v121_v6, %v99_v7  ;;  %v147_v9 = vpop.f32.mrb[1].mxu0 }
  0xe6   :  { %v102_v10 = vpop.f32.mrb[2].mxu0 }
  0xe7   :  { %v130_v11 = vpack.c.bf16 %v100_v8, %v100_v8  ;;  %v103_v12 = vadd.f32 %v121_v6, %v102_v10  ;;  %v148_v13 = vpop.f32.mrb[3].mxu0 }
  0xe9   :  { %115 = vst.msk [vmem:[%s205_s3] sm:$0xf] %vm114_vm2, %v130_v11  ;;  %v131_v14 = vpack.c.bf16 %v103_v12, %v103_v12 }
  0xeb   :  { %116 = vst.msk [vmem:[%s205_s3 + $0x4] sm:$0xf] %vm114_vm2, %v131_v14 }

// kernel: transformer_forward.27
= control target key start
LH: loop header
LB: loop body
LE: loop exit
PB: predicated region body
PF: predicated region fallthrough
CT: control target
= control target key end

     0   :  { %vm18_vm0 = vcmask 523264   ;;  %vm72_vm1 = vcmask 519168   ;;  %s132_s0 = inlined_call_operand.vmem [shape: bf16[16,64], index: 0, kind: input, shape index: {}]   ;;  %s133_s1 = inlined_call_operand.vmem [shape: f32[1,64], index: 1, kind: input, shape index: {}]   ;;  %s134_s2 = inlined_call_operand.vmem [shape: f32[1,64], index: 2, kind: input, shape index: {}]   ;;  %s135_s3 = inlined_call_operand.vmem [shape: bf16[16,64], index: 3, kind: output, shape index: {}]  }
   0x1   :  { %v86_v0 = vld [vmem:[%s132_s0] sm:$0xff]  }
   0x2   :  { %v87_v1 = vunpack.c.l.bf16 %v86_v0  ;;  %v88_v2 = vunpack.c.h.bf16 %v86_v0  ;;  %v79_v22 = vld [vmem:[%s133_s1] ss:$0 sm:$0xff] }
   0x3   :  { %v80_v24 = vld [vmem:[%s134_s2] ss:$0 sm:$0xff] }
   0x4   :  { %v19_v3 = vsel %vm18_vm0, %v87_v1, 0.0  ;;  %v22_v4 = vsel %vm18_vm0, %v88_v2, 0.0 }
   0x5   :  { %20 = vadd.xlane.f32.xlu0 %v19_v3 }
   0x9   :  { %23 = vadd.xlane.f32.xlu0 %v22_v4 }
  0x92   :  { %v21_v5 = vpop.xlane.xlu0 %20 }
  0x93   :  { %v26_v6 = vmul.f32 0.015625, %v21_v5 }
  0x95   :  { %v28_v7 = vsub.f32 %v87_v1, %v26_v6 }
  0x96   :  { %v24_v8 = vpop.xlane.xlu0 %23 }
  0x97   :  { %v27_v9 = vmul.f32 0.015625, %v24_v8  ;;  %v30_v10 = vmul.f32 %v28_v7, %v28_v7 }
  0x99   :  { %v29_v11 = vsub.f32 %v88_v2, %v27_v9  ;;  %v32_v12 = vsel %vm18_vm0, %v30_v10, 0.0 }
  0x9a   :  { %33 = vadd.xlane.f32.xlu1 %v32_v12 }
  0x9b   :  { %v31_v13 = vmul.f32 %v29_v11, %v29_v11 }
  0x9d   :  { %v35_v14 = vsel %vm18_vm0, %v31_v13, 0.0 }
  0x9e   :  { %36 = vadd.xlane.f32.xlu1 %v35_v14 }
 0x127   :  { %v34_v15 = vpop.xlane.xlu1 %33 }
 0x128   :  { %v38_v16 = vmul.f32 0.015625, %v34_v15 }
 0x12a   :  { %v40_v17 = vadd.f32 1e-05, %v38_v16 }
 0x12b   :  { %v37_v18 = vpop.xlane.xlu1 %36 }
 0x12c   :  { %89 = vrsqrt.f32 %v40_v17  ;;  %v39_v19 = vmul.f32 0.015625, %v37_v18 }
 0x12e   :  { %v41_v20 = vadd.f32 1e-05, %v39_v19 }
 0x130   :  { %91 = vrsqrt.f32 %v41_v20 }
 0x136   :  { %v90_v21 = vpop.eup %89 }
 0x137   :  { %v44_v23 = vmul.f32 %v90_v21, %v28_v7 }
 0x139   :  { %v53_v25 = vmul.f32 %v79_v22, %v44_v23 }
 0x13a   :  { %v92_v26 = vpop.eup %91 }
 0x13b   :  { %v62_v27 = vadd.f32 %v80_v24, %v53_v25  ;;  %v45_v28 = vmul.f32 %v92_v26, %v29_v11 }
 0x13d   :  { %v83_v29 = vpack.c.bf16 %v62_v27, %v62_v27  ;;  %v54_v30 = vmul.f32 %v79_v22, %v45_v28 }
 0x13f   :  { %73 = vst.msk [vmem:[%s135_s3] sm:$0xf] %vm72_vm1, %v83_v29  ;;  %v63_v31 = vadd.f32 %v80_v24, %v54_v30 }
 0x141   :  { %v84_v32 = vpack.c.bf16 %v63_v31, %v63_v31 }
 0x143   :  { %74 = vst.msk [vmem:[%s135_s3 + $0x4] sm:$0xf] %vm72_vm1, %v84_v32 }

// kernel: transformer_forward.23
= control target key start
LH: loop header
LB: loop body
LE: loop exit
PB: predicated region body
PF: predicated region fallthrough
CT: control target
= control target key end

     0   :  { %v385_v0 = vmov 0.0   ;;  %vm386_vm0 = vmmov 0   ;;  %vm73_vm1 = vcmask 523264   ;;  %vm290_vm2 = vcmask 519168   ;;  %s489_s1 = inlined_call_operand.vmem [shape: bf16[64,128], index: 1, kind: input, shape index: {}]   ;;  %s490_s3 = inlined_call_operand.vmem [shape: bf16[128,64], index: 3, kind: input, shape index: {}]   ;;  %s491_s0 = inlined_call_operand.vmem [shape: bf16[16,64], index: 0, kind: input, shape index: {}]   ;;  %s492_s2 = inlined_call_operand.vmem [shape: f32[1,128], index: 2, kind: input, shape index: {}]   ;;  %s493_s4 = inlined_call_operand.vmem [shape: f32[1,64], index: 4, kind: input, shape index: {}]   ;;  %s494_s5 = inlined_call_operand.vmem [shape: f32[1,64], index: 5, kind: input, shape index: {}]   ;;  %s495_s6 = inlined_call_operand.vmem [shape: f32[1,64], index: 6, kind: input, shape index: {}]   ;;  %s496_s7 = inlined_call_operand.vmem [shape: bf16[16,64], index: 7, kind: output, shape index: {}]  }
   0x1   :  { %333 = vmatprep.subr.bf16.mxu0 %v385_v0  ;;  %v367_v1 = vld [vmem:[%s489_s1] sm:$0xff]   ;;  %341 = vmatprep.mubr.msk.bf16.mxu0 %vm386_vm0, %v385_v0  ;;  %v368_v2 = vld [vmem:[%s489_s1 + $0x8] sm:$0xff]   ;;  %v369_v4 = vld [vmem:[%s489_s1 + $0x10] sm:$0xff]  }
   0x2   :  { %345 = vmatprep.subr.bf16.mxu1 %v385_v0  ;;  %361 = vmatprep.mubr.msk.bf16.mxu1 %vm386_vm0, %v385_v0  ;;  %v372_v3 = vld [vmem:[%s490_s3] sm:$0xff]   ;;  %v373_v5 = vld [vmem:[%s490_s3 + $0x8] sm:$0xff]   ;;  %v370_v6 = vld [vmem:[%s489_s1 + $0x18] sm:$0xff]  }
   0x3   :  { %334 = vmatpush3.bf16.msra.mxu0 %v367_v1  ;;  %346 = vmatpush3.bf16.msra.mxu1 %v372_v3  ;;  %v27_v7 = vld [vmem:[%s491_s0] sm:$0xff]   ;;  %v374_v8 = vld [vmem:[%s490_s3 + $0x10] sm:$0xff]   ;;  %v375_v9 = vld [vmem:[%s490_s3 + $0x18] sm:$0xff]  }
   0x4   :  { %335 = vmatprep.subr.bf16.mxu0 %v385_v0  ;;  %347 = vmatprep.subr.bf16.mxu1 %v385_v0  ;;  %v376_v10 = vld [vmem:[%s490_s3 + $0x20] sm:$0xff]   ;;  %v377_v11 = vld [vmem:[%s490_s3 + $0x28] sm:$0xff]   ;;  %v378_v12 = vld [vmem:[%s490_s3 + $0x30] sm:$0xff]   ;;  %v233_v25 = vunpack.c.l.bf16 %v27_v7  ;;  %v234_v29 = vunpack.c.h.bf16 %v27_v7 }
   0x5   :  { %v379_v13 = vld [vmem:[%s490_s3 + $0x38] sm:$0xff]   ;;  %v297_v14 = vld [vmem:[%s492_s2] ss:$0 sm:$0xff] }
   0x6   :  { %v304_v24 = vld [vmem:[%s493_s4] ss:$0 sm:$0xff] }
   0x7   :  { %336 = vmatpush3.bf16.msra.mxu0 %v368_v2  ;;  %348 = vmatpush3.bf16.msra.mxu1 %v373_v5  ;;  %v313_v54 = vld [vmem:[%s494_s5] ss:$0 sm:$0xff] }
   0x8   :  { %337 = vmatprep.subr.bf16.mxu0 %v385_v0  ;;  %349 = vmatprep.subr.bf16.mxu1 %v385_v0  ;;  %v314_v56 = vld [vmem:[%s495_s6] ss:$0 sm:$0xff] }
   0xb   :  { %338 = vmatpush3.bf16.msra.mxu0 %v369_v4  ;;  %350 = vmatpush3.bf16.msra.mxu1 %v374_v8 }
   0xc   :  { %339 = vmatprep.subr.bf16.mxu0 %v385_v0  ;;  %351 = vmatprep.subr.bf16.mxu1 %v385_v0 }
   0xf   :  { %340 = vmatpush3.bf16.msra.mxu0 %v370_v6  ;;  %352 = vmatpush3.bf16.msra.mxu1 %v375_v9 }
  0x10   :  { %353 = vmatprep.subr.bf16.mxu1 %v385_v0 }
  0x12   :  { %342 = vmatmul.mubr.msk.bf16.vlgmr.msra.gmra.mrb[0].mxu0 %vm73_vm1, %v27_v7 }
  0x13   :  { %354 = vmatpush3.bf16.msra.mxu1 %v376_v10 }
  0x14   :  { %355 = vmatprep.subr.bf16.mxu1 %v385_v0 }
  0x17   :  { %356 = vmatpush3.bf16.msra.mxu1 %v377_v11 }
  0x18   :  { %357 = vmatprep.subr.bf16.mxu1 %v385_v0 }
  0x1b   :  { %358 = vmatpush3.bf16.msra.mxu1 %v378_v12 }
  0x1c   :  { %359 = vmatprep.subr.bf16.mxu1 %v385_v0 }
  0x1f   :  { %360 = vmatpush3.bf16.msra.mxu1 %v379_v13 }
  0xe5   :  { %v111_v15 = vpop.f32.mrb[0].mxu0 }
  0xe6   :  { %v112_v16 = vadd.f32 %v297_v14, %v111_v15  ;;  %v343_v17 = vpop.f32.mrb[1].mxu0 }
  0xe7   :  { %v114_v18 = vpop.f32.mrb[2].mxu0 }
  0xe8   :  { %v115_v19 = vadd.f32 %v297_v14, %v114_v18  ;;  %v344_v20 = vpop.f32.mrb[3].mxu0  ;;  %v118_v21 = vmax.f32 %v112_v16, 0.0 }
  0xea   :  { %v119_v22 = vmax.f32 %v115_v19, 0.0 }
  0xec   :  { %v120_v23 = vpack.c.bf16 %v119_v22, %v118_v21 }
  0xee   :  { %362 = vmatmul.mubr.bf16.vlgmr.msra.gmra.mrb[0].mxu1 %v120_v23 }
 0x1c1   :  { %v226_v26 = vpop.f32.mrb[0].mxu1 }
 0x1c2   :  { %v227_v27 = vadd.f32 %v304_v24, %v226_v26  ;;  %v363_v28 = vpop.f32.mrb[1].mxu1 }
 0x1c3   :  { %v229_v30 = vpop.f32.mrb[2].mxu1 }
 0x1c4   :  { %v230_v31 = vadd.f32 %v304_v24, %v229_v30  ;;  %v364_v32 = vpop.f32.mrb[3].mxu1  ;;  %v235_v33 = vadd.f32 %v233_v25, %v227_v27 }
 0x1c6   :  { %v237_v34 = vsel %vm73_vm1, %v235_v33, 0.0  ;;  %v236_v35 = vadd.f32 %v234_v29, %v230_v31 }
 0x1c7   :  { %238 = vadd.xlane.f32.xlu0 %v237_v34 }
 0x1c8   :  { %v240_v36 = vsel %vm73_vm1, %v236_v35, 0.0 }
 0x1cb   :  { %241 = vadd.xlane.f32.xlu0 %v240_v36 }
 0x254   :  { %v239_v37 = vpop.xlane.xlu0 %238 }
 0x255   :  { %v244_v38 = vmul.f32 0.015625, %v239_v37 }
 0x257   :  { %v246_v39 = vsub.f32 %v235_v33, %v244_v38 }
 0x258   :  { %v242_v40 = vpop.xlane.xlu0 %241 }
 0x259   :  { %v245_v41 = vmul.f32 0.015625, %v242_v40  ;;  %v248_v42 = vmul.f32 %v246_v39, %v246_v39 }
 0x25b   :  { %v247_v43 = vsub.f32 %v236_v35, %v245_v41  ;;  %v250_v44 = vsel %vm73_vm1, %v248_v42, 0.0 }
 0x25c   :  { %251 = vadd.xlane.f32.xlu1 %v250_v44 }
 0x25d   :  { %v249_v45 = vmul.f32 %v247_v43, %v247_v43 }
 0x25f   :  { %v253_v46 = vsel %vm73_vm1, %v249_v45, 0.0 }
 0x260   :  { %254 = vadd.xlane.f32.xlu1 %v253_v46 }
 0x2e9   :  { %v252_v47 = vpop.xlane.xlu1 %251 }
 0x2ea   :  { %v256_v48 = vmul.f32 0.015625, %v252_v47 }
 0x2ec   :  { %v258_v49 = vadd.f32 1e-05, %v256_v48 }
 0x2ed   :  { %v255_v50 = vpop.xlane.xlu1 %254 }
 0x2ee   :  { %381 = vrsqrt.f32 %v258_v49  ;;  %v257_v51 = vmul.f32 0.015625, %v255_v50 }
 0x2f0   :  { %v259_v52 = vadd.f32 1e-05, %v257_v51 }
 0x2f2   :  { %383 = vrsqrt.f32 %v259_v52 }
 0x2f8   :  { %v382_v53 = vpop.eup %381 }
 0x2f9   :  { %v262_v55 = vmul.f32 %v382_v53, %v246_v39 }
 0x2fb   :  { %v271_v57 = vmul.f32 %v313_v54, %v262_v55 }
 0x2fc   :  { %v384_v58 = vpop.eup %383 }
 0x2fd   :  { %v280_v59 = vadd.f32 %v314_v56, %v271_v57  ;;  %v263_v60 = vmul.f32 %v384_v58, %v247_v43 }
 0x2ff   :  { %v317_v61 = vpack.c.bf16 %v280_v59, %v280_v59  ;;  %v272_v62 = vmul.f32 %v313_v54, %v263_v60 }
 0x301   :  { %291 = vst.msk [vmem:[%s496_s7] sm:$0xf] %vm290_vm2, %v317_v61  ;;  %v281_v63 = vadd.f32 %v314_v56, %v272_v62 }
 0x303   :  { %v318_v0 = vpack.c.bf16 %v281_v63, %v281_v63 }
 0x305   :  { %292 = vst.msk [vmem:[%s496_s7 + $0x4] sm:$0xf] %vm290_vm2, %v318_v0 }

// kernel: transformer_forward.31
= control target key start
LH: loop header
LB: loop body
LE: loop exit
PB: predicated region body
PF: predicated region fallthrough
CT: control target
= control target key end

     0   :  { %v160_v0 = vmov 0.0   ;;  %vm161_vm0 = vmmov 0   ;;  %vm61_vm1 = vcmask 523264   ;;  %s203_s1 = inlined_call_operand.vmem [shape: bf16[64,128], index: 1, kind: input, shape index: {}]   ;;  %s204_s0 = inlined_call_operand.vmem [shape: bf16[16,64], index: 0, kind: input, shape index: {}]   ;;  %s205_s2 = inlined_call_operand.vmem [shape: f32[1,128], index: 2, kind: input, shape index: {}]   ;;  %s206_s3 = inlined_call_operand.vmem [shape: bf16[16,128], index: 3, kind: output, shape index: {}]  }
   0x1   :  { %141 = vmatprep.subr.bf16.mxu0 %v160_v0  ;;  %v155_v1 = vld [vmem:[%s203_s1] sm:$0xff]   ;;  %149 = vmatprep.mubr.msk.bf16.mxu0 %vm161_vm0, %v160_v0  ;;  %v156_v2 = vld [vmem:[%s203_s1 + $0x8] sm:$0xff]   ;;  %v157_v3 = vld [vmem:[%s203_s1 + $0x10] sm:$0xff]  }
   0x2   :  { %142 = vmatpush3.bf16.msra.mxu0 %v155_v1  ;;  %v158_v4 = vld [vmem:[%s203_s1 + $0x18] sm:$0xff]   ;;  %v159_v5 = vld [vmem:[%s204_s0] sm:$0xff]  }
   0x3   :  { %143 = vmatprep.subr.bf16.mxu0 %v160_v0  ;;  %v120_v6 = vld [vmem:[%s205_s2] ss:$0 sm:$0xff] }
   0x6   :  { %144 = vmatpush3.bf16.msra.mxu0 %v156_v2 }
   0x7   :  { %145 = vmatprep.subr.bf16.mxu0 %v160_v0 }
   0xa   :  { %146 = vmatpush3.bf16.msra.mxu0 %v157_v3 }
   0xb   :  { %147 = vmatprep.subr.bf16.mxu0 %v160_v0 }
   0xe   :  { %148 = vmatpush3.bf16.msra.mxu0 %v158_v4 }
  0x11   :  { %150 = vmatmul.mubr.msk.bf16.vlgmr.msra.gmra.mrb[0].mxu0 %vm61_vm1, %v159_v5 }
  0xe4   :  { %v99_v7 = vpop.f32.mrb[0].mxu0 }
  0xe5   :  { %v151_v8 = vpop.f32.mrb[1].mxu0  ;;  %v100_v10 = vadd.f32 %v120_v6, %v99_v7 }
  0xe6   :  { %v102_v9 = vpop.f32.mrb[2].mxu0 }
  0xe7   :  { %v103_v11 = vadd.f32 %v120_v6, %v102_v9  ;;  %v152_v12 = vpop.f32.mrb[3].mxu0 }
  0xe9   :  { %v134_v13 = vpack.c.bf16 %v103_v11, %v100_v10 }
  0xeb   :  { %135 = vst [vmem:[%s206_s3] sm:$0xff] %v134_v13  }

// kernel: transformer_forward.41
= control target key start
LH: loop header
LB: loop body
LE: loop exit
PB: predicated region body
PF: predicated region fallthrough
CT: control target
= control target key end

     0   :  { %v144_v0 = vmov 0.0   ;;  %vm145_vm0 = vmmov 0   ;;  %vm61_vm1 = vcmask 523264   ;;  %vm106_vm2 = vcmask 261120   ;;  %s190_s1 = inlined_call_operand.vmem [shape: bf16[64,32], index: 1, kind: input, shape index: {}]   ;;  %s191_s0 = inlined_call_operand.vmem [shape: bf16[16,64], index: 0, kind: input, shape index: {}]   ;;  %s192_s2 = inlined_call_operand.vmem [shape: f32[1,32], index: 2, kind: input, shape index: {}]   ;;  %s193_s3 = inlined_call_operand.vmem [shape: f32[16,32], index: 3, kind: output, shape index: {}]  }
   0x1   :  { %125 = vmatprep.subr.bf16.mxu0 %v144_v0  ;;  %v139_v1 = vld [vmem:[%s190_s1] sm:$0xff]   ;;  %133 = vmatprep.mubr.msk.bf16.mxu0 %vm145_vm0, %v144_v0  ;;  %v140_v2 = vld [vmem:[%s190_s1 + $0x8] sm:$0xff]   ;;  %v141_v3 = vld [vmem:[%s190_s1 + $0x10] sm:$0xff]  }
   0x2   :  { %126 = vmatpush3.bf16.msra.mxu0 %v139_v1  ;;  %v142_v4 = vld [vmem:[%s190_s1 + $0x18] sm:$0xff]   ;;  %v143_v5 = vld [vmem:[%s191_s0] sm:$0xff]  }
   0x3   :  { %127 = vmatprep.subr.bf16.mxu0 %v144_v0  ;;  %v113_v6 = vld [vmem:[%s192_s2] ss:$0 sm:$0xff] }
   0x6   :  { %128 = vmatpush3.bf16.msra.mxu0 %v140_v2 }
   0x7   :  { %129 = vmatprep.subr.bf16.mxu0 %v144_v0 }
   0xa   :  { %130 = vmatpush3.bf16.msra.mxu0 %v141_v3 }
   0xb   :  { %131 = vmatprep.subr.bf16.mxu0 %v144_v0 }
   0xe   :  { %132 = vmatpush3.bf16.msra.mxu0 %v142_v4 }
  0x11   :  { %134 = vmatmul.mubr.msk.bf16.vlgmr.msra.gmra.mrb[0].mxu0 %vm61_vm1, %v143_v5 }
  0xe4   :  { %v99_v7 = vpop.f32.mrb[0].mxu0 }
  0xe5   :  { %v100_v8 = vadd.f32 %v113_v6, %v99_v7  ;;  %v135_v9 = vpop.f32.mrb[1].mxu0 }
  0xe6   :  { %v102_v10 = vpop.f32.mrb[2].mxu0 }
  0xe7   :  { %107 = vst.msk [vmem:[%s193_s3] sm:$0xff] %vm106_vm2, %v100_v8  ;;  %v103_v11 = vadd.f32 %v113_v6, %v102_v10  ;;  %v136_v12 = vpop.f32.mrb[3].mxu0 }
  0xe9   :  { %108 = vst.msk [vmem:[%s193_s3 + $0x8] sm:$0xff] %vm106_vm2, %v103_v11 }

// kernel: transformer_forward.29
= control target key start
LH: loop header
LB: loop body
LE: loop exit
PB: predicated region body
PF: predicated region fallthrough
CT: control target
= control target key end

     0   :  { %s3611_s27 = smov 0   ;;  %s4221_s0 = inlined_call_operand.vmem [shape: bf16[2,16,8,4], index: 0, kind: input, shape index: {}]   ;;  %s4222_s1 = inlined_call_operand.vmem [shape: bf16[2,16,8,4], index: 1, kind: input, shape index: {}]   ;;  %s4223_s2 = inlined_call_operand.vmem [shape: bf16[2,16,8,4], index: 2, kind: input, shape index: {}]   ;;  %s4224_s3 = inlined_call_operand.vmem [shape: bf16[16,4,64], index: 3, kind: input, shape index: {}]   ;;  %s4225_s4 = inlined_call_operand.vmem [shape: f32[1,64], index: 4, kind: input, shape index: {}]   ;;  %s4226_s5 = inlined_call_operand.vmem [shape: bf16[2,8,64], index: 5, kind: input, shape index: {}]   ;;  %s4227_s6 = inlined_call_operand.vmem [shape: f32[1,64], index: 6, kind: input, shape index: {}]   ;;  %s4228_s7 = inlined_call_operand.vmem [shape: f32[1,64], index: 7, kind: input, shape index: {}]   ;;  %s4229_s8 = inlined_call_operand.vmem [shape: bf16[2,8,64], index: 8, kind: output, shape index: {}]  }
   0x1 LB: > { %s3027_s28 = sadd.s32 4294967295, %s3562_s27   ;;  %p3031_p0 = scmp.ge.s32.totalorder %s3562_s27, 1  ;;  %s3562_s27 = sphi %s3611_s27, %s18_s27  }
   0x2   : > { %p291_p1 = scmp.lt.s32.totalorder %s3562_s27, 3 }
   0x4   : > { %p292_p2 = pnand %p3031_p0, %p291_p1 }
   0x5   : > { %p338_p3 = scmp.lt.s32.totalorder (!%p292_p2), %s3027_s28, 1  ;;  %v3564_v0 = vmov (!%p292_p2), 0.0   ;;  %vm3565_vm0 = vmmov (!%p292_p2), 0   ;;  %vm410_vm1 = vcmask (!%p292_p2), 31744   ;;  %vm1163_vm2 = vcmask (!%p292_p2), 64512  }
   0x6   : > { %295 = sbr.rel (%p292_p2) target bundleno = 1364 (0x554), region = 52  ;;  %3192 = vmatprep.subr.bf16.mxu0 (!%p292_p2), %v3564_v0  ;;  %3198 = vmatprep.subr.bf16.mxu1 (!%p292_p2), %v3564_v0  ;;  %vm1359_vm3 = vcmask (!%p292_p2), 1043456   ;;  %vm2128_vm4 = vcmask (!%p292_p2), 1041408   ;;  %vm2862_vm5 = vcmask (!%p292_p2), 523264   ;;  %vm2936_vm6 = vcmask (!%p292_p2), 519168  }
   0x7   : > { %3194 = vmatprep.mubr.msk.bf16.mxu0 (!%p292_p2), %vm3565_vm0, %v3564_v0  ;;  %3200 = vmatprep.mubr.msk.bf16.mxu1 (!%p292_p2), %vm3565_vm0, %v3564_v0 }
   0xd   : > { %s4231_s28 = smov (!%p338_p3, %s3027_s28), 1 }
   0xe   : > { %s3628_s29 = sshll.u32 %s4231_s28, 6  ;;  %s3038_s9 = sshll.u32 %s4231_s28, 2 }
   0xf   : > { %s3634_s10 = scalar_lea.vmem %s4222_s1, %s3628_s29  ;;  %s3644_s13 = scalar_lea.vmem %s4221_s0, %s3628_s29 }
  0x10   : > { %v378_v1 = vld [vmem:[%s3634_s10] sm:$0xf]  ;;  %v379_v2 = vld [vmem:[%s3634_s10 + $0x4] sm:$0xf]  ;;  %v380_v5 = vld [vmem:[%s3634_s10 + $0x8] sm:$0xf]  ;;  %s3866_s16 = scalar_lea.vmem %s4223_s2, %s3628_s29  ;;  %s356_s12 = scalar_lea.vmem %s4226_s5, %s3038_s9 }
  0x11   : > { %v415_v3 = vsel %vm410_vm1, %v378_v1, 0  ;;  %v461_v4 = vsel %vm410_vm1, %v379_v2, 0  ;;  %v381_v6 = vld [vmem:[%s3634_s10 + $0xc] sm:$0xf]  ;;  %v362_v7 = vld [vmem:[%s3644_s13] sm:$0xf]  ;;  %s360_s21 = scalar_lea.vmem %s4229_s8, %s3038_s9 }
  0x12   : > { %3193 = vmatpush3.bf16.xpose.msra.mxu0 %v415_v3  ;;  %3199 = vmatpush3.bf16.xpose.msra.mxu1 %v461_v4  ;;  %v363_v8 = vld [vmem:[%s3644_s13 + $0x4] sm:$0xf]  ;;  %v507_v9 = vsel %vm410_vm1, %v380_v5, 0  ;;  %v553_v10 = vsel %vm410_vm1, %v381_v6, 0  ;;  %v382_v11 = vld [vmem:[%s3634_s10 + $0x10] sm:$0xf] }
  0x13   : > { %3204 = vmatprep.subr.bf16.mxu0 %v3564_v0  ;;  %3210 = vmatprep.subr.bf16.mxu1 %v3564_v0  ;;  %v383_v12 = vld [vmem:[%s3634_s10 + $0x14] sm:$0xf]  ;;  %v364_v13 = vld [vmem:[%s3644_s13 + $0x8] sm:$0xf]  ;;  %v365_v14 = vld [vmem:[%s3644_s13 + $0xc] sm:$0xf] }
  0x14   : > { %v599_v15 = vsel %vm410_vm1, %v382_v11, 0  ;;  %v645_v16 = vsel %vm410_vm1, %v383_v12, 0  ;;  %v384_v17 = vld [vmem:[%s3634_s10 + $0x18] sm:$0xf]  ;;  %v385_v18 = vld [vmem:[%s3634_s10 + $0x1c] sm:$0xf] }
  0x15   : > { %v366_v19 = vld [vmem:[%s3644_s13 + $0x10] sm:$0xf]  ;;  %v367_v20 = vld [vmem:[%s3644_s13 + $0x14] sm:$0xf]  ;;  %v691_v21 = vsel %vm410_vm1, %v384_v17, 0  ;;  %v737_v22 = vsel %vm410_vm1, %v385_v18, 0 }
  0x16   : > { %v386_v23 = vld [vmem:[%s3634_s10 + $0x20] sm:$0xf]  ;;  %v387_v24 = vld [vmem:[%s3634_s10 + $0x24] sm:$0xf]  ;;  %v368_v25 = vld [vmem:[%s3644_s13 + $0x18] sm:$0xf] }
  0x17   : > { %v369_v26 = vld [vmem:[%s3644_s13 + $0x1c] sm:$0xf]  ;;  %v783_v27 = vsel %vm410_vm1, %v386_v23, 0  ;;  %v829_v28 = vsel %vm410_vm1, %v387_v24, 0  ;;  %v388_v29 = vld [vmem:[%s3634_s10 + $0x28] sm:$0xf] }
  0x18   : > { %v389_v30 = vld [vmem:[%s3634_s10 + $0x2c] sm:$0xf]  ;;  %v370_v31 = vld [vmem:[%s3644_s13 + $0x20] sm:$0xf]  ;;  %v371_v32 = vld [vmem:[%s3644_s13 + $0x24] sm:$0xf] }
  0x19   : > { %3195 = vmatmul.mubr.msk.bf16.vlgmr.msra.gmra.mrb[0].mxu0 %vm410_vm1, %v362_v7  ;;  %3201 = vmatmul.mubr.msk.bf16.vlgmr.msra.gmra.mrb[0].mxu1 %vm410_vm1, %v363_v8  ;;  %v875_v33 = vsel %vm410_vm1, %v388_v29, 0  ;;  %v921_v34 = vsel %vm410_vm1, %v389_v30, 0  ;;  %v390_v35 = vld [vmem:[%s3634_s10 + $0x30] sm:$0xf]  ;;  %v391_v36 = vld [vmem:[%s3634_s10 + $0x34] sm:$0xf] }
  0x1a   : > { %3205 = vmatpush3.bf16.xpose.msra.mxu0 %v507_v9  ;;  %3211 = vmatpush3.bf16.xpose.msra.mxu1 %v553_v10  ;;  %v372_v37 = vld [vmem:[%s3644_s13 + $0x28] sm:$0xf]  ;;  %v373_v38 = vld [vmem:[%s3644_s13 + $0x2c] sm:$0xf]  ;;  %v967_v39 = vsel %vm410_vm1, %v390_v35, 0  ;;  %v1013_v40 = vsel %vm410_vm1, %v391_v36, 0 }
  0x1b   : > { %3206 = vmatprep.mubr.msk.bf16.mxu0 %vm3565_vm0, %v3564_v0  ;;  %3212 = vmatprep.mubr.msk.bf16.mxu1 %vm3565_vm0, %v3564_v0  ;;  %v392_v41 = vld [vmem:[%s3634_s10 + $0x38] sm:$0xf]  ;;  %v393_v42 = vld [vmem:[%s3634_s10 + $0x3c] sm:$0xf]  ;;  %v374_v43 = vld [vmem:[%s3644_s13 + $0x30] sm:$0xf] }
  0x1c   : > { %3216 = vmatprep.subr.bf16.mxu0 %v3564_v0  ;;  %3222 = vmatprep.subr.bf16.mxu1 %v3564_v0  ;;  %v375_v44 = vld [vmem:[%s3644_s13 + $0x34] sm:$0xf]  ;;  %v1059_v45 = vsel %vm410_vm1, %v392_v41, 0  ;;  %v1105_v46 = vsel %vm410_vm1, %v393_v42, 0  ;;  %v376_v47 = vld [vmem:[%s3644_s13 + $0x38] sm:$0xf] }
  0x1d   : > { %v377_v48 = vld [vmem:[%s3644_s13 + $0x3c] sm:$0xf] }
  0x21   : > { %3207 = vmatmul.mubr.msk.bf16.vlgmr.msra.gmra.mrb[4].mxu0 %vm410_vm1, %v364_v13  ;;  %3213 = vmatmul.mubr.msk.bf16.vlgmr.msra.gmra.mrb[4].mxu1 %vm410_vm1, %v365_v14 }
  0x22   : > { %3217 = vmatpush3.bf16.xpose.msra.mxu0 %v599_v15  ;;  %3223 = vmatpush3.bf16.xpose.msra.mxu1 %v645_v16 }
  0x23   : > { %3218 = vmatprep.mubr.msk.bf16.mxu0 %vm3565_vm0, %v3564_v0  ;;  %3224 = vmatprep.mubr.msk.bf16.mxu1 %vm3565_vm0, %v3564_v0 }
  0x24   : > { %3228 = vmatprep.subr.bf16.mxu0 %v3564_v0  ;;  %3234 = vmatprep.subr.bf16.mxu1 %v3564_v0 }
  0x29   : > { %3219 = vmatmul.mubr.msk.bf16.vlgmr.msra.gmra.mrb[8].mxu0 %vm410_vm1, %v366_v19  ;;  %3225 = vmatmul.mubr.msk.bf16.vlgmr.msra.gmra.mrb[8].mxu1 %vm410_vm1, %v367_v20 }
  0x2a   : > { %3229 = vmatpush3.bf16.xpose.msra.mxu0 %v691_v21  ;;  %3235 = vmatpush3.bf16.xpose.msra.mxu1 %v737_v22 }
  0x2b   : > { %3230 = vmatprep.mubr.msk.bf16.mxu0 %vm3565_vm0, %v3564_v0  ;;  %3236 = vmatprep.mubr.msk.bf16.mxu1 %vm3565_vm0, %v3564_v0 }
  0x2c   : > { %3240 = vmatprep.subr.bf16.mxu0 %v3564_v0  ;;  %3246 = vmatprep.subr.bf16.mxu1 %v3564_v0 }
  0x31   : > { %3231 = vmatmul.mubr.msk.bf16.vlgmr.msra.gmra.mrb[12].mxu0 %vm410_vm1, %v368_v25  ;;  %3237 = vmatmul.mubr.msk.bf16.vlgmr.msra.gmra.mrb[12].mxu1 %vm410_vm1, %v369_v26 }
  0x32   : > { %3241 = vmatpush3.bf16.xpose.msra.mxu0 %v783_v27  ;;  %3247 = vmatpush3.bf16.xpose.msra.mxu1 %v829_v28 }
  0x33   : > { %3242 = vmatprep.mubr.msk.bf16.mxu0 %vm3565_vm0, %v3564_v0  ;;  %3248 = vmatprep.mubr.msk.bf16.mxu1 %vm3565_vm0, %v3564_v0 }
  0x34   : > { %3252 = vmatprep.subr.bf16.mxu0 %v3564_v0  ;;  %3258 = vmatprep.subr.bf16.mxu1 %v3564_v0 }
  0x39   : > { %3243 = vmatmul.mubr.msk.bf16.vlgmr.msra.gmra.mrb[16].mxu0 %vm410_vm1, %v370_v31  ;;  %3249 = vmatmul.mubr.msk.bf16.vlgmr.msra.gmra.mrb[16].mxu1 %vm410_vm1, %v371_v32 }
  0x3a   : > { %3253 = vmatpush3.bf16.xpose.msra.mxu0 %v875_v33  ;;  %3259 = vmatpush3.bf16.xpose.msra.mxu1 %v921_v34 }
  0x3b   : > { %3254 = vmatprep.mubr.msk.bf16.mxu0 %vm3565_vm0, %v3564_v0  ;;  %3260 = vmatprep.mubr.msk.bf16.mxu1 %vm3565_vm0, %v3564_v0 }
  0x3c   : > { %3264 = vmatprep.subr.bf16.mxu0 %v3564_v0  ;;  %3270 = vmatprep.subr.bf16.mxu1 %v3564_v0 }
  0x41   : > { %3255 = vmatmul.mubr.msk.bf16.vlgmr.msra.gmra.mrb[20].mxu0 %vm410_vm1, %v372_v37  ;;  %3261 = vmatmul.mubr.msk.bf16.vlgmr.msra.gmra.mrb[20].mxu1 %vm410_vm1, %v373_v38 }
  0x42   : > { %3265 = vmatpush3.bf16.xpose.msra.mxu0 %v967_v39  ;;  %3271 = vmatpush3.bf16.xpose.msra.mxu1 %v1013_v40 }
  0x43   : > { %3266 = vmatprep.mubr.msk.bf16.mxu0 %vm3565_vm0, %v3564_v0  ;;  %3272 = vmatprep.mubr.msk.bf16.mxu1 %vm3565_vm0, %v3564_v0 }
  0x44   : > { %3276 = vmatprep.subr.bf16.mxu0 %v3564_v0  ;;  %3282 = vmatprep.subr.bf16.mxu1 %v3564_v0 }
  0x49   : > { %3267 = vmatmul.mubr.msk.bf16.vlgmr.msra.gmra.mrb[24].mxu0 %vm410_vm1, %v374_v43  ;;  %3273 = vmatmul.mubr.msk.bf16.vlgmr.msra.gmra.mrb[24].mxu1 %vm410_vm1, %v375_v44 }
  0x4a   : > { %3277 = vmatpush3.bf16.xpose.msra.mxu0 %v1059_v45  ;;  %3283 = vmatpush3.bf16.xpose.msra.mxu1 %v1105_v46 }
  0x4b   : > { %3278 = vmatprep.mubr.msk.bf16.mxu0 %vm3565_vm0, %v3564_v0  ;;  %3284 = vmatprep.mubr.msk.bf16.mxu1 %vm3565_vm0, %v3564_v0 }
  0x4c   : > { %3288 = vmatprep.subr.bf16.mxu0 %v3564_v0  ;;  %3294 = vmatprep.subr.bf16.mxu1 %v3564_v0 }
  0x51   : > { %3279 = vmatmul.mubr.msk.bf16.vlgmr.msra.gmra.mrb[28].mxu0 %vm410_vm1, %v376_v47  ;;  %3285 = vmatmul.mubr.msk.bf16.vlgmr.msra.gmra.mrb[28].mxu1 %vm410_vm1, %v377_v48 }
  0x52   : > { %3290 = vmatprep.mubr.msk.bf16.mxu0 %vm3565_vm0, %v3564_v0  ;;  %3296 = vmatprep.mubr.msk.bf16.mxu1 %vm3565_vm0, %v3564_v0 }
  0xec   : > { %v451_v49 = vpop.f32.mrb[0].mxu0  ;;  %v497_v50 = vpop.f32.mrb[0].mxu1 }
  0xed   : > { %v3754_v51 = vmul.f32 0.5, %v451_v49  ;;  %v3196_v52 = vpop.f32.mrb[1].mxu0  ;;  %v3756_v53 = vmul.f32 0.5, %v497_v50  ;;  %v3202_v54 = vpop.f32.mrb[1].mxu1 }
  0xee   : > { %v454_v55 = vpop.f32.mrb[2].mxu0  ;;  %v500_v56 = vpop.f32.mrb[2].mxu1 }
  0xef   : > { %v3197_v57 = vpop.f32.mrb[3].mxu0  ;;  %v1164_v58 = vsel %vm1163_vm2, %v3754_v51, -inf  ;;  %v3203_v59 = vpop.f32.mrb[3].mxu1  ;;  %v1167_v60 = vsel %vm1163_vm2, %v3756_v53, -inf }
  0xf0   : > { %1165 = vmax.xlane.f32.xlu0 %v1164_v58 }
  0xf4   : > { %1168 = vmax.xlane.f32.xlu0 %v1167_v60  ;;  %v543_v61 = vpop.f32.mrb[4].mxu0  ;;  %v589_v62 = vpop.f32.mrb[4].mxu1 }
  0xf5   : > { %v3762_v63 = vmul.f32 0.5, %v543_v61  ;;  %v3208_v1 = vpop.f32.mrb[5].mxu0  ;;  %v3764_v2 = vmul.f32 0.5, %v589_v62  ;;  %v3214_v3 = vpop.f32.mrb[5].mxu1 }
  0xf6   : > { %v546_v4 = vpop.f32.mrb[6].mxu0  ;;  %v592_v5 = vpop.f32.mrb[6].mxu1 }
  0xf7   : > { %v3209_v6 = vpop.f32.mrb[7].mxu0  ;;  %v1170_v7 = vsel %vm1163_vm2, %v3762_v63, -inf  ;;  %v3215_v8 = vpop.f32.mrb[7].mxu1  ;;  %v1173_v9 = vsel %vm1163_vm2, %v3764_v2, -inf }
  0xf8   : > { %1171 = vmax.xlane.f32.xlu1 %v1170_v7 }
  0xfc   : > { %v681_v10 = vpop.f32.mrb[8].mxu1  ;;  %1174 = vmax.xlane.f32.xlu1 %v1173_v9  ;;  %v635_v11 = vpop.f32.mrb[8].mxu0 }
  0xfd   : > { %v3770_v12 = vmul.f32 0.5, %v681_v10  ;;  %v3772_v13 = vmul.f32 0.5, %v635_v11  ;;  %v3220_v14 = vpop.f32.mrb[9].mxu0  ;;  %v3226_v15 = vpop.f32.mrb[9].mxu1 }
  0xfe   : > { %v638_v16 = vpop.f32.mrb[10].mxu0  ;;  %v684_v17 = vpop.f32.mrb[10].mxu1 }
  0xff   : > { %v3221_v18 = vpop.f32.mrb[11].mxu0  ;;  %v1179_v19 = vsel %vm1163_vm2, %v3770_v12, -inf  ;;  %v1176_v20 = vsel %vm1163_vm2, %v3772_v13, -inf  ;;  %v3227_v21 = vpop.f32.mrb[11].mxu1 }
 0x100   : > { %1180 = vmax.xlane.f32.xlu1 %v1179_v19  ;;  %1177 = vmax.xlane.f32.xlu0 %v1176_v20 }
 0x104   : > { %v727_v22 = vpop.f32.mrb[12].mxu0  ;;  %v773_v23 = vpop.f32.mrb[12].mxu1 }
 0x105   : > { %v3778_v24 = vmul.f32 0.5, %v727_v22  ;;  %v3780_v25 = vmul.f32 0.5, %v773_v23  ;;  %v3232_v26 = vpop.f32.mrb[13].mxu0  ;;  %v3238_v27 = vpop.f32.mrb[13].mxu1 }
 0x106   : > { %v730_v28 = vpop.f32.mrb[14].mxu0  ;;  %v776_v29 = vpop.f32.mrb[14].mxu1 }
 0x107   : > { %v3233_v30 = vpop.f32.mrb[15].mxu0  ;;  %v1185_v31 = vsel %vm1163_vm2, %v3780_v25, -inf  ;;  %v1182_v32 = vsel %vm1163_vm2, %v3778_v24, -inf  ;;  %v3239_v33 = vpop.f32.mrb[15].mxu1 }
 0x108   : > { %1186 = vmax.xlane.f32.xlu1 %v1185_v31  ;;  %1183 = vmax.xlane.f32.xlu0 %v1182_v32 }
 0x10c   : > { %v819_v34 = vpop.f32.mrb[16].mxu0  ;;  %v865_v35 = vpop.f32.mrb[16].mxu1 }
 0x10d   : > { %v3786_v36 = vmul.f32 0.5, %v819_v34  ;;  %v3788_v37 = vmul.f32 0.5, %v865_v35  ;;  %v3244_v38 = vpop.f32.mrb[17].mxu0  ;;  %v3250_v39 = vpop.f32.mrb[17].mxu1 }
 0x10e   : > { %v822_v40 = vpop.f32.mrb[18].mxu0  ;;  %v868_v41 = vpop.f32.mrb[18].mxu1 }
 0x10f   : > { %v3245_v42 = vpop.f32.mrb[19].mxu0  ;;  %v1191_v43 = vsel %vm1163_vm2, %v3788_v37, -inf  ;;  %v1188_v44 = vsel %vm1163_vm2, %v3786_v36, -inf  ;;  %v3251_v45 = vpop.f32.mrb[19].mxu1 }
 0x110   : > { %1192 = vmax.xlane.f32.xlu1 %v1191_v43  ;;  %1189 = vmax.xlane.f32.xlu0 %v1188_v44 }
 0x114   : > { %v911_v46 = vpop.f32.mrb[20].mxu0  ;;  %v957_v47 = vpop.f32.mrb[20].mxu1 }
 0x115   : > { %v3794_v48 = vmul.f32 0.5, %v911_v46  ;;  %v3796_v49 = vmul.f32 0.5, %v957_v47  ;;  %v3256_v50 = vpop.f32.mrb[21].mxu0  ;;  %v3262_v52 = vpop.f32.mrb[21].mxu1 }
 0x116   : > { %v914_v54 = vpop.f32.mrb[22].mxu0  ;;  %v960_v55 = vpop.f32.mrb[22].mxu1 }
 0x117   : > { %v3257_v56 = vpop.f32.mrb[23].mxu0  ;;  %v1197_v57 = vsel %vm1163_vm2, %v3796_v49, -inf  ;;  %v1194_v58 = vsel %vm1163_vm2, %v3794_v48, -inf  ;;  %v3263_v59 = vpop.f32.mrb[23].mxu1 }
 0x118   : > { %1198 = vmax.xlane.f32.xlu1 %v1197_v57  ;;  %1195 = vmax.xlane.f32.xlu0 %v1194_v58 }
 0x11c   : > { %v1003_v60 = vpop.f32.mrb[24].mxu0  ;;  %v1049_v61 = vpop.f32.mrb[24].mxu1 }
 0x11d   : > { %v3802_v62 = vmul.f32 0.5, %v1003_v60  ;;  %v3804_v1 = vmul.f32 0.5, %v1049_v61  ;;  %v3268_v3 = vpop.f32.mrb[25].mxu0  ;;  %v3274_v4 = vpop.f32.mrb[25].mxu1 }
 0x11e   : > { %v1006_v5 = vpop.f32.mrb[26].mxu0  ;;  %v1052_v6 = vpop.f32.mrb[26].mxu1 }
 0x11f   : > { %v3269_v7 = vpop.f32.mrb[27].mxu0  ;;  %v1203_v8 = vsel %vm1163_vm2, %v3804_v1, -inf  ;;  %v1200_v9 = vsel %vm1163_vm2, %v3802_v62, -inf  ;;  %v3275_v10 = vpop.f32.mrb[27].mxu1 }
 0x120   : > { %1204 = vmax.xlane.f32.xlu1 %v1203_v8  ;;  %1201 = vmax.xlane.f32.xlu0 %v1200_v9 }
 0x124   : > { %v1095_v11 = vpop.f32.mrb[28].mxu0  ;;  %v1141_v14 = vpop.f32.mrb[28].mxu1 }
 0x125   : > { %v3810_v15 = vmul.f32 0.5, %v1095_v11  ;;  %v3812_v16 = vmul.f32 0.5, %v1141_v14  ;;  %v3280_v17 = vpop.f32.mrb[29].mxu0  ;;  %v3286_v18 = vpop.f32.mrb[29].mxu1 }
 0x126   : > { %v1098_v19 = vpop.f32.mrb[30].mxu0  ;;  %v1144_v20 = vpop.f32.mrb[30].mxu1  ;;  %v394_v18 = vld [vmem:[%s3866_s16] sm:$0xf] }
 0x127   : > { %v3281_v21 = vpop.f32.mrb[31].mxu0  ;;  %v1209_v22 = vsel %vm1163_vm2, %v3812_v16, -inf  ;;  %v1206_v23 = vsel %vm1163_vm2, %v3810_v15, -inf  ;;  %v3287_v26 = vpop.f32.mrb[31].mxu1 }
 0x128   : > { %1210 = vmax.xlane.f32.xlu1 %v1209_v22  ;;  %1207 = vmax.xlane.f32.xlu0 %v1206_v23 }
 0x17d   : > { %v1166_v27 = vpop.xlane.xlu0 %1165 }
 0x17e   : > { %v1212_v28 = vsub.f32 %v3754_v51, %v1166_v27 }
 0x180   : > { %v1228_v29 = vmul.f32 1.442695, %v1212_v28 }
 0x181   : > { %v1169_v30 = vpop.xlane.xlu0 %1168 }
 0x182   : > { %3490 = vpow2.f32 %v1228_v29  ;;  %v1213_v31 = vsub.f32 %v3756_v53, %v1169_v30 }
 0x184   : > { %v1230_v32 = vmul.f32 1.442695, %v1213_v31 }
 0x185   : > { %v1172_v33 = vpop.xlane.xlu1 %1171 }
 0x186   : > { %3492 = vpow2.f32 %v1230_v32  ;;  %v1214_v34 = vsub.f32 %v3762_v63, %v1172_v33  ;;  %v396_v32 = vld [vmem:[%s3866_s16 + $0x8] sm:$0xf] }
 0x188   : > { %v1232_v35 = vmul.f32 1.442695, %v1214_v34 }
 0x189   : > { %v1175_v38 = vpop.xlane.xlu1 %1174 }
 0x18a   : > { %3494 = vpow2.f32 %v1232_v35  ;;  %v1215_v39 = vsub.f32 %v3764_v2, %v1175_v38  ;;  %v3886_v35 = vsel %vm1359_vm3, %v396_v32, 0  ;;  %v397_v38 = vld [vmem:[%s3866_s16 + $0xc] sm:$0xf] }
 0x18c   : > { %v3822_v40 = vpop.eup %3490  ;;  %v1234_v41 = vmul.f32 1.442695, %v1215_v39 }
 0x18d   : > { %v1181_v42 = vpop.xlane.xlu1 %1180  ;;  %v1178_v51 = vpop.xlane.xlu0 %1177  ;;  %v1260_v43 = vsel %vm1163_vm2, %v3822_v40, 0.0 }
 0x18e   : > { %3496 = vpow2.f32 %v1234_v41  ;;  %v1217_v53 = vsub.f32 %v3770_v12, %v1181_v42  ;;  %v1216_v44 = vsub.f32 %v3772_v13, %v1178_v51  ;;  %1261 = vadd.xlane.f32.xlu0 %v1260_v43 }
 0x190   : > { %v3828_v63 = vpop.eup %3492  ;;  %v1238_v45 = vmul.f32 1.442695, %v1217_v53  ;;  %v1236_v46 = vmul.f32 1.442695, %v1216_v44 }
 0x191   : > { %v1263_v2 = vsel %vm1163_vm2, %v3828_v63, 0.0 }
 0x192   : > { %3498 = vpow2.f32 %v1238_v45  ;;  %1264 = vadd.xlane.f32.xlu1 %v1263_v2  ;;  %v398_v45 = vld [vmem:[%s3866_s16 + $0x10] sm:$0xf] }
 0x193   : > { %3500 = vpow2.f32 %v1236_v46 }
 0x194   : > { %v3832_v47 = vpop.eup %3494 }
 0x195   : > { %v1187_v50 = vpop.xlane.xlu1 %1186  ;;  %v1184_v52 = vpop.xlane.xlu0 %1183  ;;  %v1266_v12 = vsel %vm1163_vm2, %v3832_v47, 0.0 }
 0x196   : > { %v1219_v13 = vsub.f32 %v3780_v25, %v1187_v50  ;;  %v1218_v54 = vsub.f32 %v3778_v24, %v1184_v52  ;;  %1267 = vadd.xlane.f32.xlu0 %v1266_v12  ;;  %v3904_v50 = vsel %vm1359_vm3, %v398_v45, 0  ;;  %v399_v52 = vld [vmem:[%s3866_s16 + $0x14] sm:$0xf] }
 0x198   : > { %v3838_v55 = vpop.eup %3496  ;;  %v1242_v56 = vmul.f32 1.442695, %v1219_v13  ;;  %v1240_v57 = vmul.f32 1.442695, %v1218_v54 }
 0x199   : > { %v1269_v58 = vsel %vm1163_vm2, %v3838_v55, 0.0 }
 0x19a   : > { %3502 = vpow2.f32 %v1242_v56  ;;  %1270 = vadd.xlane.f32.xlu1 %v1269_v58  ;;  %v400_v56 = vld [vmem:[%s3866_s16 + $0x18] sm:$0xf]  ;;  %v401_v58 = vld [vmem:[%s3866_s16 + $0x1c] sm:$0xf] }
 0x19b   : > { %3504 = vpow2.f32 %v1240_v57  ;;  %v3920_v57 = vsel %vm1359_vm3, %v400_v56, 0 }
 0x19c   : > { %v3842_v59 = vpop.eup %3498 }
 0x19d   : > { %v3844_v60 = vpop.eup %3500  ;;  %v1193_v61 = vpop.xlane.xlu1 %1192  ;;  %v1275_v24 = vsel %vm1163_vm2, %v3842_v59, 0.0 }
 0x19e   : > { %v1190_v3 = vpop.xlane.xlu0 %1189  ;;  %v1221_v25 = vsub.f32 %v3788_v37, %v1193_v61  ;;  %1276 = vadd.xlane.f32.xlu1 %v1275_v24  ;;  %v1272_v5 = vsel %vm1163_vm2, %v3844_v60, 0.0 }
 0x19f   : > { %v1220_v4 = vsub.f32 %v3786_v36, %v1190_v3  ;;  %1273 = vadd.xlane.f32.xlu0 %v1272_v5  ;;  %v3926_v3 = vsel %vm1359_vm3, %v401_v58, 0  ;;  %v402_v5 = vld [vmem:[%s3866_s16 + $0x20] sm:$0xf] }
 0x1a0   : > { %v1246_v6 = vmul.f32 1.442695, %v1221_v25 }
 0x1a1   : > { %v1244_v7 = vmul.f32 1.442695, %v1220_v4 }
 0x1a2   : > { %3506 = vpow2.f32 %v1246_v6  ;;  %v3936_v6 = vsel %vm1359_vm3, %v402_v5, 0 }
 0x1a3   : > { %3508 = vpow2.f32 %v1244_v7  ;;  %v403_v7 = vld [vmem:[%s3866_s16 + $0x24] sm:$0xf] }
 0x1a4   : > { %v3852_v8 = vpop.eup %3502 }
 0x1a5   : > { %v3854_v9 = vpop.eup %3504  ;;  %v1199_v10 = vpop.xlane.xlu1 %1198  ;;  %v1281_v37 = vsel %vm1163_vm2, %v3852_v8, 0.0 }
 0x1a6   : > { %v1196_v11 = vpop.xlane.xlu0 %1195  ;;  %v1223_v36 = vsub.f32 %v3796_v49, %v1199_v10  ;;  %1282 = vadd.xlane.f32.xlu1 %v1281_v37  ;;  %v1278_v17 = vsel %vm1163_vm2, %v3854_v9, 0.0  ;;  %v1361_v49 = vsel %vm1359_vm3, %v394_v18, 0  ;;  %v3940_v10 = vsel %vm1359_vm3, %v403_v7, 0 }
 0x1a7   : > { %v1222_v14 = vsub.f32 %v3794_v48, %v1196_v11  ;;  %1279 = vadd.xlane.f32.xlu0 %v1278_v17  ;;  %3289 = vmatpush3.bf16.msra.mxu0 %v1361_v49  ;;  %v395_v48 = vld [vmem:[%s3866_s16 + $0x4] sm:$0xf]  ;;  %v404_v11 = vld [vmem:[%s3866_s16 + $0x28] sm:$0xf]  ;;  %v406_v17 = vld [vmem:[%s3866_s16 + $0x30] sm:$0xf] }
 0x1a8   : > { %v1250_v19 = vmul.f32 1.442695, %v1223_v36  ;;  %3300 = vmatprep.subr.bf16.mxu0 %v3564_v0  ;;  %v1407_v22 = vsel %vm1359_vm3, %v395_v48, 0  ;;  %v3944_v37 = vsel %vm1359_vm3, %v404_v11, 0  ;;  %v405_v36 = vld [vmem:[%s3866_s16 + $0x2c] sm:$0xf] }
 0x1a9   : > { %v1248_v20 = vmul.f32 1.442695, %v1222_v14  ;;  %3295 = vmatpush3.bf16.msra.mxu1 %v1407_v22  ;;  %v3948_v14 = vsel %vm1359_vm3, %v405_v36, 0  ;;  %v3952_v18 = vsel %vm1359_vm3, %v406_v17, 0  ;;  %v408_v49 = vld [vmem:[%s3866_s16 + $0x38] sm:$0xf] }
 0x1aa   : > { %3510 = vpow2.f32 %v1250_v19  ;;  %3306 = vmatprep.subr.bf16.mxu1 %v3564_v0  ;;  %v407_v19 = vld [vmem:[%s3866_s16 + $0x34] sm:$0xf]  ;;  %v3960_v48 = vsel %vm1359_vm3, %v408_v49, 0  ;;  %v409_v22 = vld [vmem:[%s3866_s16 + $0x3c] sm:$0xf] }
 0x1ab   : > { %3512 = vpow2.f32 %v1248_v20  ;;  %v3956_v20 = vsel %vm1359_vm3, %v407_v19, 0 }
 0x1ac   : > { %v3872_v21 = vpop.eup %3506 }
 0x1ad   : > { %v3875_v23 = vpop.eup %3508  ;;  %v1205_v26 = vpop.xlane.xlu1 %1204  ;;  %v1287_v28 = vsel %vm1163_vm2, %v3872_v21, 0.0 }
 0x1ae   : > { %v1202_v27 = vpop.xlane.xlu0 %1201  ;;  %v1225_v29 = vsub.f32 %v3804_v1, %v1205_v26  ;;  %1288 = vadd.xlane.f32.xlu1 %v1287_v28  ;;  %v1284_v31 = vsel %vm1163_vm2, %v3875_v23, 0.0  ;;  %v3964_v26 = vsel %vm1359_vm3, %v409_v22, 0 }
 0x1af   : > { %v1224_v30 = vsub.f32 %v3802_v62, %v1202_v27  ;;  %1285 = vadd.xlane.f32.xlu0 %v1284_v31  ;;  %v3892_v62 = vsel %vm1359_vm3, %v397_v38, 0 }
 0x1b0   : > { %v1254_v33 = vmul.f32 1.442695, %v1225_v29 }
 0x1b1   : > { %v1252_v34 = vmul.f32 1.442695, %v1224_v30 }
 0x1b2   : > { %3514 = vpow2.f32 %v1254_v33 }
 0x1b3   : > { %3516 = vpow2.f32 %v1252_v34 }
 0x1b4   : > { %v3889_v1 = vpop.eup %3510 }
 0x1b5   : > { %v3894_v39 = vpop.eup %3512  ;;  %v1211_v41 = vpop.xlane.xlu1 %1210  ;;  %v1293_v51 = vsel %vm1163_vm2, %v3889_v1, 0.0 }
 0x1b6   : > { %v1208_v42 = vpop.xlane.xlu0 %1207  ;;  %v1227_v43 = vsub.f32 %v3812_v16, %v1211_v41  ;;  %1294 = vadd.xlane.f32.xlu1 %v1293_v51  ;;  %v1290_v44 = vsel %vm1163_vm2, %v3894_v39, 0.0 }
 0x1b7   : > { %v1226_v53 = vsub.f32 %v3810_v15, %v1208_v42  ;;  %1291 = vadd.xlane.f32.xlu0 %v1290_v44  ;;  %v3910_v15 = vsel %vm1359_vm3, %v399_v52, 0 }
 0x1b8   : > { %v1258_v46 = vmul.f32 1.442695, %v1227_v43 }
 0x1b9   : > { %v1256_v2 = vmul.f32 1.442695, %v1226_v53 }
 0x1ba   : > { %3518 = vpow2.f32 %v1258_v46 }
 0x1bb   : > { %3520 = vpow2.f32 %v1256_v2 }
 0x1bc   : > { %v3907_v12 = vpop.eup %3514 }
 0x1bd   : > { %v3912_v16 = vpop.eup %3516  ;;  %v1299_v13 = vsel %vm1163_vm2, %v3907_v12, 0.0 }
 0x1be   : > { %1300 = vadd.xlane.f32.xlu1 %v1299_v13  ;;  %v1296_v54 = vsel %vm1163_vm2, %v3912_v16, 0.0 }
 0x1bf   : > { %1297 = vadd.xlane.f32.xlu0 %v1296_v54 }
 0x1c4   : > { %v3923_v61 = vpop.eup %3518 }
 0x1c5   : > { %v3928_v24 = vpop.eup %3520  ;;  %v1305_v25 = vsel %vm1163_vm2, %v3923_v61, 0.0 }
 0x1c6   : > { %1306 = vadd.xlane.f32.xlu1 %v1305_v25  ;;  %v1302_v4 = vsel %vm1163_vm2, %v3928_v24, 0.0 }
 0x1c7   : > { %1303 = vadd.xlane.f32.xlu0 %v1302_v4 }
 0x21b   : > { %v1262_v27 = vpop.xlane.xlu0 %1261 }
 0x21c   : > { %3522 = vrcp.f32 %v1262_v27 }
 0x21f   : > { %v1265_v28 = vpop.xlane.xlu1 %1264 }
 0x220   : > { %3524 = vrcp.f32 %v1265_v28 }
 0x223   : > { %v1268_v29 = vpop.xlane.xlu0 %1267 }
 0x224   : > { %3526 = vrcp.f32 %v1268_v29 }
 0x226   : > { %v3523_v30 = vpop.eup %3522 }
 0x227   : > { %v1324_v31 = vmul.f32 %v3523_v30, %v3822_v40  ;;  %v1271_v32 = vpop.xlane.xlu1 %1270 }
 0x228   : > { %3528 = vrcp.f32 %v1271_v32 }
 0x229   : > { %v1340_v33 = vpack.c.bf16 %v1324_v31, %v1324_v31 }
 0x22a   : > { %v3525_v34 = vpop.eup %3524 }
 0x22b   : > { %v1325_v38 = vmul.f32 %v3525_v34, %v3828_v63  ;;  %v1277_v41 = vpop.xlane.xlu1 %1276  ;;  %3291 = vmatmul.mubr.msk.bf16.vlgmr.msra.gmra.mrb[32].mxu0 %vm1163_vm2, %v1340_v33 }
 0x22c   : > { %3530 = vrcp.f32 %v1277_v41  ;;  %v1274_v42 = vpop.xlane.xlu0 %1273  ;;  %3301 = vmatpush3.bf16.msra.mxu0 %v3886_v35  ;;  %3302 = vmatprep.mubr.msk.bf16.mxu0 %vm3565_vm0, %v3564_v0 }
 0x22d   : > { %3532 = vrcp.f32 %v1274_v42  ;;  %v1341_v51 = vpack.c.bf16 %v1325_v38, %v1325_v38  ;;  %3312 = vmatprep.subr.bf16.mxu0 %v3564_v0 }
 0x22e   : > { %v3527_v40 = vpop.eup %3526 }
 0x22f   : > { %v1326_v43 = vmul.f32 %v3527_v40, %v3832_v47  ;;  %3297 = vmatmul.mubr.msk.bf16.vlgmr.msra.gmra.mrb[32].mxu1 %vm1163_vm2, %v1341_v51  ;;  %v2112_v51 = vld [vmem:[%s4224_s3 + $0x6] sm:$0x3] }
 0x230   : > { %3307 = vmatpush3.bf16.msra.mxu1 %v3892_v62  ;;  %3308 = vmatprep.mubr.msk.bf16.mxu1 %vm3565_vm0, %v3564_v0 }
 0x231   : > { %v1342_v63 = vpack.c.bf16 %v1326_v43, %v1326_v43  ;;  %3318 = vmatprep.subr.bf16.mxu1 %v3564_v0 }
 0x232   : > { %v3529_v35 = vpop.eup %3528 }
 0x233   : > { %v1327_v53 = vmul.f32 %v3529_v35, %v3838_v55  ;;  %v1283_v44 = vpop.xlane.xlu1 %1282  ;;  %3303 = vmatmul.mubr.msk.bf16.vlgmr.msra.gmra.mrb[36].mxu0 %vm1163_vm2, %v1342_v63 }
 0x234   : > { %3534 = vrcp.f32 %v1283_v44  ;;  %v1280_v45 = vpop.xlane.xlu0 %1279  ;;  %3313 = vmatpush3.bf16.msra.mxu0 %v3904_v50  ;;  %3314 = vmatprep.mubr.msk.bf16.mxu0 %vm3565_vm0, %v3564_v0 }
 0x235   : > { %3536 = vrcp.f32 %v1280_v45  ;;  %v1343_v47 = vpack.c.bf16 %v1327_v53, %v1327_v53  ;;  %3324 = vmatprep.subr.bf16.mxu0 %v3564_v0  ;;  %v2268_v53 = vsel %vm2128_vm4, %v2112_v51, 0  ;;  %v2113_v45 = vld [vmem:[%s4224_s3 + $0x8] sm:$0x3] }
 0x236   : > { %v3531_v62 = vpop.eup %3530 }
 0x237   : > { %v3533_v46 = vpop.eup %3532  ;;  %3309 = vmatmul.mubr.msk.bf16.vlgmr.msra.gmra.mrb[36].mxu1 %vm1163_vm2, %v1343_v47  ;;  %v1329_v2 = vmul.f32 %v3531_v62, %v3842_v59 }
 0x238   : > { %v1328_v55 = vmul.f32 %v3533_v46, %v3844_v60  ;;  %3319 = vmatpush3.bf16.msra.mxu1 %v3910_v15  ;;  %3320 = vmatprep.mubr.msk.bf16.mxu1 %vm3565_vm0, %v3564_v0 }
 0x239   : > { %3330 = vmatprep.subr.bf16.mxu1 %v3564_v0  ;;  %v1345_v54 = vpack.c.bf16 %v1329_v2, %v1329_v2  ;;  %v2314_v2 = vsel %vm2128_vm4, %v2113_v45, 0 }
 0x23a   : > { %v1344_v50 = vpack.c.bf16 %v1328_v55, %v1328_v55 }
 0x23b   : > { %v1289_v52 = vpop.xlane.xlu1 %1288 }
 0x23c   : > { %3538 = vrcp.f32 %v1289_v52  ;;  %3315 = vmatmul.mubr.msk.bf16.vlgmr.msra.gmra.mrb[40].mxu0 %vm1163_vm2, %v1344_v50  ;;  %v1286_v13 = vpop.xlane.xlu0 %1285  ;;  %v2114_v52 = vld [vmem:[%s4224_s3 + $0xa] sm:$0x3] }
 0x23d   : > { %3540 = vrcp.f32 %v1286_v13  ;;  %3325 = vmatpush3.bf16.msra.mxu0 %v3920_v57  ;;  %3326 = vmatprep.mubr.msk.bf16.mxu0 %vm3565_vm0, %v3564_v0 }
 0x23e   : > { %v3535_v60 = vpop.eup %3534  ;;  %3336 = vmatprep.subr.bf16.mxu0 %v3564_v0 }
 0x23f   : > { %v3537_v15 = vpop.eup %3536  ;;  %3321 = vmatmul.mubr.msk.bf16.vlgmr.msra.gmra.mrb[40].mxu1 %vm1163_vm2, %v1345_v54  ;;  %v1331_v56 = vmul.f32 %v3535_v60, %v3852_v8 }
 0x240   : > { %v1330_v59 = vmul.f32 %v3537_v15, %v3854_v9  ;;  %3331 = vmatpush3.bf16.msra.mxu1 %v3926_v3  ;;  %3332 = vmatprep.mubr.msk.bf16.mxu1 %vm3565_vm0, %v3564_v0 }
 0x241   : > { %3342 = vmatprep.subr.bf16.mxu1 %v3564_v0  ;;  %v1347_v4 = vpack.c.bf16 %v1331_v56, %v1331_v56 }
 0x242   : > { %v1346_v57 = vpack.c.bf16 %v1330_v59, %v1330_v59  ;;  %v2360_v59 = vsel %vm2128_vm4, %v2114_v52, 0 }
 0x243   : > { %v1295_v58 = vpop.xlane.xlu1 %1294 }
 0x244   : > { %3542 = vrcp.f32 %v1295_v58  ;;  %3327 = vmatmul.mubr.msk.bf16.vlgmr.msra.gmra.mrb[44].mxu0 %vm1163_vm2, %v1346_v57  ;;  %v1292_v25 = vpop.xlane.xlu0 %1291  ;;  %v2115_v58 = vld [vmem:[%s4224_s3 + $0xc] sm:$0x3] }
 0x245   : > { %3544 = vrcp.f32 %v1292_v25  ;;  %3337 = vmatpush3.bf16.msra.mxu0 %v3936_v6  ;;  %3338 = vmatprep.mubr.msk.bf16.mxu0 %vm3565_vm0, %v3564_v0 }
 0x246   : > { %v3539_v9 = vpop.eup %3538  ;;  %3348 = vmatprep.subr.bf16.mxu0 %v3564_v0 }
 0x247   : > { %v3541_v3 = vpop.eup %3540  ;;  %3333 = vmatmul.mubr.msk.bf16.vlgmr.msra.gmra.mrb[44].mxu1 %vm1163_vm2, %v1347_v4  ;;  %v1333_v5 = vmul.f32 %v3539_v9, %v3872_v21 }
 0x248   : > { %v1332_v8 = vmul.f32 %v3541_v3, %v3875_v23  ;;  %3343 = vmatpush3.bf16.msra.mxu1 %v3940_v10  ;;  %3344 = vmatprep.mubr.msk.bf16.mxu1 %vm3565_vm0, %v3564_v0  ;;  %v2406_v3 = vsel %vm2128_vm4, %v2115_v58, 0 }
 0x249   : > { %3354 = vmatprep.subr.bf16.mxu1 %v3564_v0  ;;  %v1349_v36 = vpack.c.bf16 %v1333_v5, %v1333_v5 }
 0x24a   : > { %v1348_v6 = vpack.c.bf16 %v1332_v8, %v1332_v8  ;;  %v2116_v8 = vld [vmem:[%s4224_s3 + $0xe] sm:$0x3] }
 0x24b   : > { %v1301_v7 = vpop.xlane.xlu1 %1300 }
 0x24c   : > { %3546 = vrcp.f32 %v1301_v7  ;;  %3339 = vmatmul.mubr.msk.bf16.vlgmr.msra.gmra.mrb[48].mxu0 %vm1163_vm2, %v1348_v6  ;;  %v1298_v11 = vpop.xlane.xlu0 %1297 }
 0x24d   : > { %3548 = vrcp.f32 %v1298_v11  ;;  %3349 = vmatpush3.bf16.msra.mxu0 %v3944_v37  ;;  %3350 = vmatprep.mubr.msk.bf16.mxu0 %vm3565_vm0, %v3564_v0 }
 0x24e   : > { %v3543_v23 = vpop.eup %3542  ;;  %3360 = vmatprep.subr.bf16.mxu0 %v3564_v0 }
 0x24f   : > { %v3545_v10 = vpop.eup %3544  ;;  %3345 = vmatmul.mubr.msk.bf16.vlgmr.msra.gmra.mrb[48].mxu1 %vm1163_vm2, %v1349_v36  ;;  %v1335_v17 = vmul.f32 %v3543_v23, %v3889_v1  ;;  %v2452_v23 = vsel %vm2128_vm4, %v2116_v8, 0 }
 0x250   : > { %v1334_v21 = vmul.f32 %v3545_v10, %v3894_v39  ;;  %3355 = vmatpush3.bf16.msra.mxu1 %v3948_v14  ;;  %3356 = vmatprep.mubr.msk.bf16.mxu1 %vm3565_vm0, %v3564_v0 }
 0x251   : > { %3366 = vmatprep.subr.bf16.mxu1 %v3564_v0  ;;  %v1351_v22 = vpack.c.bf16 %v1335_v17, %v1335_v17  ;;  %v2117_v17 = vld [vmem:[%s4224_s3 + $0x10] sm:$0x3] }
 0x252   : > { %v1350_v37 = vpack.c.bf16 %v1334_v21, %v1334_v21 }
 0x253   : > { %v1307_v19 = vpop.xlane.xlu1 %1306 }
 0x254   : > { %3550 = vrcp.f32 %v1307_v19  ;;  %3351 = vmatmul.mubr.msk.bf16.vlgmr.msra.gmra.mrb[52].mxu0 %vm1163_vm2, %v1350_v37  ;;  %v1304_v49 = vpop.xlane.xlu0 %1303 }
 0x255   : > { %3552 = vrcp.f32 %v1304_v49  ;;  %3361 = vmatpush3.bf16.msra.mxu0 %v3952_v18  ;;  %3362 = vmatprep.mubr.msk.bf16.mxu0 %vm3565_vm0, %v3564_v0 }
 0x256   : > { %v3547_v39 = vpop.eup %3546  ;;  %3372 = vmatprep.subr.bf16.mxu0 %v3564_v0 }
 0x257   : > { %v3549_v14 = vpop.eup %3548  ;;  %3357 = vmatmul.mubr.msk.bf16.vlgmr.msra.gmra.mrb[52].mxu1 %vm1163_vm2, %v1351_v22  ;;  %v1337_v27 = vmul.f32 %v3547_v39, %v3907_v12  ;;  %v2109_v12 = vld [vmem:[%s4224_s3] sm:$0x3]  ;;  %v2498_v22 = vsel %vm2128_vm4, %v2117_v17, 0  ;;  %v2118_v39 = vld [vmem:[%s4224_s3 + $0x12] sm:$0x3] }
 0x258   : > { %v1336_v1 = vmul.f32 %v3549_v14, %v3912_v16  ;;  %3367 = vmatpush3.bf16.msra.mxu1 %v3956_v20  ;;  %3368 = vmatprep.mubr.msk.bf16.mxu1 %vm3565_vm0, %v3564_v0  ;;  %v2130_v31 = vsel %vm2128_vm4, %v2109_v12, 0 }
 0x259   : > { %3378 = vmatprep.subr.bf16.mxu1 %v3564_v0  ;;  %v1353_v28 = vpack.c.bf16 %v1337_v27, %v1337_v27 }
 0x25a   : > { %v1352_v18 = vpack.c.bf16 %v1336_v1, %v1336_v1 }
 0x25c   : > { %3363 = vmatmul.mubr.msk.bf16.vlgmr.msra.gmra.mrb[56].mxu0 %vm1163_vm2, %v1352_v18 }
 0x25d   : > { %3373 = vmatpush3.bf16.msra.mxu0 %v3960_v48  ;;  %3374 = vmatprep.mubr.msk.bf16.mxu0 %vm3565_vm0, %v3564_v0 }
 0x25e   : > { %v3551_v29 = vpop.eup %3550  ;;  %3384 = vmatprep.subr.bf16.mxu0 %v3564_v0 }
 0x25f   : > { %v3553_v16 = vpop.eup %3552  ;;  %3369 = vmatmul.mubr.msk.bf16.vlgmr.msra.gmra.mrb[56].mxu1 %vm1163_vm2, %v1353_v28  ;;  %v1339_v48 = vmul.f32 %v3551_v29, %v3923_v61  ;;  %v2110_v61 = vld [vmem:[%s4224_s3 + $0x2] sm:$0x3]  ;;  %v2544_v29 = vsel %vm2128_vm4, %v2118_v39, 0 }
 0x260   : > { %v1338_v20 = vmul.f32 %v3553_v16, %v3928_v24  ;;  %3379 = vmatpush3.bf16.msra.mxu1 %v3964_v26  ;;  %3380 = vmatprep.mubr.msk.bf16.mxu1 %vm3565_vm0, %v3564_v0  ;;  %v2176_v24 = vsel %vm2128_vm4, %v2110_v61, 0  ;;  %v2111_v26 = vld [vmem:[%s4224_s3 + $0x4] sm:$0x3]  ;;  %v2120_v61 = vld [vmem:[%s4224_s3 + $0x16] sm:$0x3] }
 0x261   : > { %3390 = vmatprep.subr.bf16.mxu1 %v3564_v0  ;;  %v1355_v32 = vpack.c.bf16 %v1339_v48, %v1339_v48  ;;  %v2222_v41 = vsel %vm2128_vm4, %v2111_v26, 0 }
 0x262   : > { %v1354_v30 = vpack.c.bf16 %v1338_v20, %v1338_v20  ;;  %v2119_v20 = vld [vmem:[%s4224_s3 + $0x14] sm:$0x3] }
 0x264   : > { %3375 = vmatmul.mubr.msk.bf16.vlgmr.msra.gmra.mrb[60].mxu0 %vm1163_vm2, %v1354_v30 }
 0x265   : > { %3385 = vmatpush3.bf16.msra.mxu0 %v2130_v31  ;;  %3386 = vmatprep.mubr.msk.bf16.mxu0 %vm3565_vm0, %v3564_v0 }
 0x266   : > { %3396 = vmatprep.subr.bf16.mxu0 %v3564_v0 }
 0x267   : > { %3381 = vmatmul.mubr.msk.bf16.vlgmr.msra.gmra.mrb[60].mxu1 %vm1163_vm2, %v1355_v32  ;;  %v2590_v32 = vsel %vm2128_vm4, %v2119_v20, 0 }
 0x268   : > { %3392 = vmatprep.mubr.msk.bf16.mxu1 %vm3565_vm0, %v3564_v0  ;;  %3391 = vmatpush3.bf16.msra.mxu1 %v2176_v24 }
 0x269   : > { %3402 = vmatprep.subr.bf16.mxu1 %v3564_v0 }
 0x2fe   : > { %v1397_v33 = vpop.f32.mrb[32].mxu0 }
 0x2ff   : > { %v2093_v34 = vpack.c.bf16 %v1397_v33, %v1397_v33  ;;  %v3292_v38 = vpop.f32.mrb[33].mxu0 }
 0x300   : > { %v1400_v42 = vpop.f32.mrb[34].mxu0 }
 0x301   : > { %v3293_v40 = vpop.f32.mrb[35].mxu0  ;;  %3387 = vmatmul.mubr.msk.bf16.vlgmr.msra.gmra.mrb[64].mxu0 %vm410_vm1, %v2093_v34 }
 0x302   : > { %v1443_v43 = vpop.f32.mrb[32].mxu1  ;;  %3397 = vmatpush3.bf16.msra.mxu0 %v2222_v41  ;;  %3398 = vmatprep.mubr.msk.bf16.mxu0 %vm3565_vm0, %v3564_v0  ;;  %v2636_v41 = vsel %vm2128_vm4, %v2120_v61, 0  ;;  %v2121_v40 = vld [vmem:[%s4224_s3 + $0x18] sm:$0x3] }
 0x303   : > { %v2094_v63 = vpack.c.bf16 %v1443_v43, %v1443_v43  ;;  %v3298_v35 = vpop.f32.mrb[33].mxu1  ;;  %3408 = vmatprep.subr.bf16.mxu0 %v3564_v0 }
 0x304   : > { %v1446_v44 = vpop.f32.mrb[34].mxu1 }
 0x305   : > { %v3299_v47 = vpop.f32.mrb[35].mxu1  ;;  %3393 = vmatmul.mubr.msk.bf16.vlgmr.msra.gmra.mrb[64].mxu1 %vm410_vm1, %v2094_v63  ;;  %v2122_v44 = vld [vmem:[%s4224_s3 + $0x1a] sm:$0x3] }
 0x306   : > { %v1489_v62 = vpop.f32.mrb[36].mxu0  ;;  %3403 = vmatpush3.bf16.msra.mxu1 %v2268_v53  ;;  %3404 = vmatprep.mubr.msk.bf16.mxu1 %vm3565_vm0, %v3564_v0  ;;  %v2682_v53 = vsel %vm2128_vm4, %v2121_v40, 0 }
 0x307   : > { %v2095_v46 = vpack.c.bf16 %v1489_v62, %v1489_v62  ;;  %v3304_v55 = vpop.f32.mrb[37].mxu0  ;;  %3414 = vmatprep.subr.bf16.mxu1 %v3564_v0 }
 0x308   : > { %v1492_v50 = vpop.f32.mrb[38].mxu0 }
 0x309   : > { %v3305_v13 = vpop.f32.mrb[39].mxu0  ;;  %3399 = vmatmul.mubr.msk.bf16.vlgmr.msra.gmra.mrb[68].mxu0 %vm410_vm1, %v2095_v46 }
 0x30a   : > { %v1535_v54 = vpop.f32.mrb[36].mxu1  ;;  %3409 = vmatpush3.bf16.msra.mxu0 %v2314_v2  ;;  %3410 = vmatprep.mubr.msk.bf16.mxu0 %vm3565_vm0, %v3564_v0  ;;  %v2728_v2 = vsel %vm2128_vm4, %v2122_v44, 0  ;;  %v2123_v13 = vld [vmem:[%s4224_s3 + $0x1c] sm:$0x3] }
 0x30b   : > { %v2096_v60 = vpack.c.bf16 %v1535_v54, %v1535_v54  ;;  %v3310_v15 = vpop.f32.mrb[37].mxu1  ;;  %3420 = vmatprep.subr.bf16.mxu0 %v3564_v0 }
 0x30c   : > { %v1538_v56 = vpop.f32.mrb[38].mxu1 }
 0x30d   : > { %v3311_v57 = vpop.f32.mrb[39].mxu1  ;;  %3405 = vmatmul.mubr.msk.bf16.vlgmr.msra.gmra.mrb[68].mxu1 %vm410_vm1, %v2096_v60  ;;  %v2124_v56 = vld [vmem:[%s4224_s3 + $0x1e] sm:$0x3] }
 0x30e   : > { %3415 = vmatpush3.bf16.msra.mxu1 %v2360_v59  ;;  %3416 = vmatprep.mubr.msk.bf16.mxu1 %vm3565_vm0, %v3564_v0  ;;  %v2774_v59 = vsel %vm2128_vm4, %v2123_v13, 0 }
 0x30f   : > { %v1581_v25 = vpop.f32.mrb[40].mxu0  ;;  %3426 = vmatprep.subr.bf16.mxu1 %v3564_v0 }
 0x310   : > { %v2097_v4 = vpack.c.bf16 %v1581_v25, %v1581_v25  ;;  %v3316_v9 = vpop.f32.mrb[41].mxu0 }
 0x311   : > { %v1584_v5 = vpop.f32.mrb[42].mxu0 }
 0x312   : > { %v3317_v6 = vpop.f32.mrb[43].mxu0  ;;  %3411 = vmatmul.mubr.msk.bf16.vlgmr.msra.gmra.mrb[72].mxu0 %vm410_vm1, %v2097_v4  ;;  %v1627_v7 = vpop.f32.mrb[40].mxu1 }
 0x313   : > { %v2098_v11 = vpack.c.bf16 %v1627_v7, %v1627_v7  ;;  %v3322_v36 = vpop.f32.mrb[41].mxu1  ;;  %3421 = vmatpush3.bf16.msra.mxu0 %v2406_v3  ;;  %3422 = vmatprep.mubr.msk.bf16.mxu0 %vm3565_vm0, %v3564_v0  ;;  %v2820_v3 = vsel %vm2128_vm4, %v2124_v56, 0 }
 0x314   : > { %v1630_v10 = vpop.f32.mrb[42].mxu1  ;;  %3432 = vmatprep.subr.bf16.mxu0 %v3564_v0 }
 0x315   : > { %v3323_v21 = vpop.f32.mrb[43].mxu1  ;;  %3417 = vmatmul.mubr.msk.bf16.vlgmr.msra.gmra.mrb[72].mxu1 %vm410_vm1, %v2098_v11 }
 0x316   : > { %3427 = vmatpush3.bf16.msra.mxu1 %v2452_v23  ;;  %3428 = vmatprep.mubr.msk.bf16.mxu1 %vm3565_vm0, %v3564_v0 }
 0x317   : > { %v1673_v37 = vpop.f32.mrb[44].mxu0  ;;  %3438 = vmatprep.subr.bf16.mxu1 %v3564_v0 }
 0x318   : > { %v2099_v19 = vpack.c.bf16 %v1673_v37, %v1673_v37  ;;  %v3328_v49 = vpop.f32.mrb[45].mxu0 }
 0x319   : > { %v1676_v14 = vpop.f32.mrb[46].mxu0 }
 0x31a   : > { %v3329_v1 = vpop.f32.mrb[47].mxu0  ;;  %3423 = vmatmul.mubr.msk.bf16.vlgmr.msra.gmra.mrb[76].mxu0 %vm410_vm1, %v2099_v19  ;;  %v1719_v27 = vpop.f32.mrb[44].mxu1 }
 0x31b   : > { %v2100_v18 = vpack.c.bf16 %v1719_v27, %v1719_v27  ;;  %v3334_v28 = vpop.f32.mrb[45].mxu1  ;;  %3433 = vmatpush3.bf16.msra.mxu0 %v2498_v22  ;;  %3434 = vmatprep.mubr.msk.bf16.mxu0 %vm3565_vm0, %v3564_v0 }
 0x31c   : > { %v1722_v16 = vpop.f32.mrb[46].mxu1  ;;  %3444 = vmatprep.subr.bf16.mxu0 %v3564_v0 }
 0x31d   : > { %v3335_v12 = vpop.f32.mrb[47].mxu1  ;;  %3429 = vmatmul.mubr.msk.bf16.vlgmr.msra.gmra.mrb[76].mxu1 %vm410_vm1, %v2100_v18 }
 0x31e   : > { %3439 = vmatpush3.bf16.msra.mxu1 %v2544_v29  ;;  %3440 = vmatprep.mubr.msk.bf16.mxu1 %vm3565_vm0, %v3564_v0 }
 0x31f   : > { %v1765_v48 = vpop.f32.mrb[48].mxu0  ;;  %3450 = vmatprep.subr.bf16.mxu1 %v3564_v0 }
 0x320   : > { %v2101_v30 = vpack.c.bf16 %v1765_v48, %v1765_v48  ;;  %v3340_v31 = vpop.f32.mrb[49].mxu0 }
 0x321   : > { %v1768_v24 = vpop.f32.mrb[50].mxu0 }
 0x322   : > { %v3341_v26 = vpop.f32.mrb[51].mxu0  ;;  %3435 = vmatmul.mubr.msk.bf16.vlgmr.msra.gmra.mrb[80].mxu0 %vm410_vm1, %v2101_v30  ;;  %v1811_v33 = vpop.f32.mrb[48].mxu1 }
 0x323   : > { %v2102_v34 = vpack.c.bf16 %v1811_v33, %v1811_v33  ;;  %v3346_v38 = vpop.f32.mrb[49].mxu1  ;;  %3445 = vmatpush3.bf16.msra.mxu0 %v2590_v32  ;;  %3446 = vmatprep.mubr.msk.bf16.mxu0 %vm3565_vm0, %v3564_v0 }
 0x324   : > { %v1814_v42 = vpop.f32.mrb[50].mxu1  ;;  %3456 = vmatprep.subr.bf16.mxu0 %v3564_v0 }
 0x325   : > { %v3347_v51 = vpop.f32.mrb[51].mxu1  ;;  %3441 = vmatmul.mubr.msk.bf16.vlgmr.msra.gmra.mrb[80].mxu1 %vm410_vm1, %v2102_v34 }
 0x326   : > { %3451 = vmatpush3.bf16.msra.mxu1 %v2636_v41  ;;  %3452 = vmatprep.mubr.msk.bf16.mxu1 %vm3565_vm0, %v3564_v0 }
 0x327   : > { %v1857_v43 = vpop.f32.mrb[52].mxu0  ;;  %3462 = vmatprep.subr.bf16.mxu1 %v3564_v0 }
 0x328   : > { %v2103_v63 = vpack.c.bf16 %v1857_v43, %v1857_v43  ;;  %v3352_v35 = vpop.f32.mrb[53].mxu0 }
 0x329   : > { %v1860_v45 = vpop.f32.mrb[54].mxu0 }
 0x32a   : > { %v3353_v47 = vpop.f32.mrb[55].mxu0  ;;  %3447 = vmatmul.mubr.msk.bf16.vlgmr.msra.gmra.mrb[84].mxu0 %vm410_vm1, %v2103_v63  ;;  %v1903_v62 = vpop.f32.mrb[52].mxu1 }
 0x32b   : > { %v2104_v46 = vpack.c.bf16 %v1903_v62, %v1903_v62  ;;  %v3358_v55 = vpop.f32.mrb[53].mxu1  ;;  %3457 = vmatpush3.bf16.msra.mxu0 %v2682_v53  ;;  %3458 = vmatprep.mubr.msk.bf16.mxu0 %vm3565_vm0, %v3564_v0 }
 0x32c   : > { %v1906_v50 = vpop.f32.mrb[54].mxu1  ;;  %3468 = vmatprep.subr.bf16.mxu0 %v3564_v0 }
 0x32d   : > { %v3359_v52 = vpop.f32.mrb[55].mxu1  ;;  %3453 = vmatmul.mubr.msk.bf16.vlgmr.msra.gmra.mrb[84].mxu1 %vm410_vm1, %v2104_v46 }
 0x32e   : > { %3463 = vmatpush3.bf16.msra.mxu1 %v2728_v2  ;;  %3464 = vmatprep.mubr.msk.bf16.mxu1 %vm3565_vm0, %v3564_v0 }
 0x32f   : > { %v1949_v54 = vpop.f32.mrb[56].mxu0  ;;  %3474 = vmatprep.subr.bf16.mxu1 %v3564_v0 }
 0x330   : > { %v2105_v60 = vpack.c.bf16 %v1949_v54, %v1949_v54  ;;  %v3364_v15 = vpop.f32.mrb[57].mxu0 }
 0x331   : > { %v1952_v57 = vpop.f32.mrb[58].mxu0 }
 0x332   : > { %v3365_v58 = vpop.f32.mrb[59].mxu0  ;;  %3459 = vmatmul.mubr.msk.bf16.vlgmr.msra.gmra.mrb[88].mxu0 %vm410_vm1, %v2105_v60  ;;  %v1995_v25 = vpop.f32.mrb[56].mxu1 }
 0x333   : > { %v2106_v4 = vpack.c.bf16 %v1995_v25, %v1995_v25  ;;  %v3370_v9 = vpop.f32.mrb[57].mxu1  ;;  %3469 = vmatpush3.bf16.msra.mxu0 %v2774_v59  ;;  %3470 = vmatprep.mubr.msk.bf16.mxu0 %vm3565_vm0, %v3564_v0 }
 0x334   : > { %v1998_v8 = vpop.f32.mrb[58].mxu1 }
 0x335   : > { %v3371_v5 = vpop.f32.mrb[59].mxu1  ;;  %3465 = vmatmul.mubr.msk.bf16.vlgmr.msra.gmra.mrb[88].mxu1 %vm410_vm1, %v2106_v4 }
 0x336   : > { %3475 = vmatpush3.bf16.msra.mxu1 %v2820_v3  ;;  %3476 = vmatprep.mubr.msk.bf16.mxu1 %vm3565_vm0, %v3564_v0 }
 0x337   : > { %v2041_v6 = vpop.f32.mrb[60].mxu0 }
 0x338   : > { %v2107_v7 = vpack.c.bf16 %v2041_v6, %v2041_v6  ;;  %v3376_v11 = vpop.f32.mrb[61].mxu0 }
 0x339   : > { %v2044_v36 = vpop.f32.mrb[62].mxu0 }
 0x33a   : > { %v3377_v23 = vpop.f32.mrb[63].mxu0  ;;  %3471 = vmatmul.mubr.msk.bf16.vlgmr.msra.gmra.mrb[92].mxu0 %vm410_vm1, %v2107_v7  ;;  %v2087_v10 = vpop.f32.mrb[60].mxu1 }
 0x33b   : > { %v2108_v21 = vpack.c.bf16 %v2087_v10, %v2087_v10  ;;  %v3382_v17 = vpop.f32.mrb[61].mxu1 }
 0x33c   : > { %v2090_v37 = vpop.f32.mrb[62].mxu1 }
 0x33d   : > { %v3383_v19 = vpop.f32.mrb[63].mxu1  ;;  %3477 = vmatmul.mubr.msk.bf16.vlgmr.msra.gmra.mrb[92].mxu1 %vm410_vm1, %v2108_v21 }
 0x3d4   : > { %v2166_v49 = vpop.f32.mrb[64].mxu0 }
 0x3d5   : > { %v3388_v22 = vpop.f32.mrb[65].mxu0  ;;  %v2863_v1 = vsel %vm2862_vm5, %v2166_v49, 0.0 }
 0x3d6   : > { %v2169_v39 = vpop.f32.mrb[66].mxu0 }
 0x3d7   : > { %v3389_v14 = vpop.f32.mrb[67].mxu0 }
 0x3d8   : > { %v2212_v0 = vpop.f32.mrb[64].mxu1 }
 0x3d9   : > { %v2864_v27 = vsel %vm2862_vm5, %v2212_v0, 0.0  ;;  %v3394_v18 = vpop.f32.mrb[65].mxu1 }
 0x3da   : > { %v2865_v28 = vadd.f32 %v2864_v27, %v2863_v1  ;;  %v2215_v29 = vpop.f32.mrb[66].mxu1 }
 0x3db   : > { %v3395_v16 = vpop.f32.mrb[67].mxu1 }
 0x3dc   : > { %v2258_v12 = vpop.f32.mrb[68].mxu0 }
 0x3dd   : > { %v2866_v20 = vsel %vm2862_vm5, %v2258_v12, 0.0  ;;  %v3400_v48 = vpop.f32.mrb[69].mxu0 }
 0x3de   : > { %v2867_v30 = vadd.f32 %v2866_v20, %v2865_v28  ;;  %v2261_v31 = vpop.f32.mrb[70].mxu0 }
 0x3df   : > { %v3401_v32 = vpop.f32.mrb[71].mxu0 }
 0x3e0   : > { %v2304_v61 = vpop.f32.mrb[68].mxu1 }
 0x3e1   : > { %v2868_v24 = vsel %vm2862_vm5, %v2304_v61, 0.0  ;;  %v3406_v26 = vpop.f32.mrb[69].mxu1 }
 0x3e2   : > { %v2869_v33 = vadd.f32 %v2868_v24, %v2867_v30  ;;  %v2307_v34 = vpop.f32.mrb[70].mxu1 }
 0x3e3   : > { %v3407_v38 = vpop.f32.mrb[71].mxu1 }
 0x3e5   : > { %v2350_v41 = vpop.f32.mrb[72].mxu0 }
 0x3e6   : > { %v2870_v42 = vsel %vm2862_vm5, %v2350_v41, 0.0  ;;  %v3412_v51 = vpop.f32.mrb[73].mxu0 }
 0x3e7   : > { %v2871_v40 = vadd.f32 %v2870_v42, %v2869_v33  ;;  %v2353_v43 = vpop.f32.mrb[74].mxu0  ;;  %v2902_v42 = vld [vmem:[%s356_s12] sm:$0xf] }
 0x3e8   : > { %v3413_v63 = vpop.f32.mrb[75].mxu0  ;;  %v2396_v35 = vpop.f32.mrb[72].mxu1 }
 0x3e9   : > { %v2872_v53 = vsel %vm2862_vm5, %v2396_v35, 0.0  ;;  %v3418_v44 = vpop.f32.mrb[73].mxu1  ;;  %v3088_v63 = vld [vmem:[%s4225_s4] ss:$0 sm:$0xff] }
 0x3ea   : > { %v2873_v45 = vadd.f32 %v2872_v53, %v2871_v40  ;;  %v2399_v47 = vpop.f32.mrb[74].mxu1 }
 0x3eb   : > { %v3419_v62 = vpop.f32.mrb[75].mxu1 }
 0x3ed   : > { %v2442_v46 = vpop.f32.mrb[76].mxu0 }
 0x3ee   : > { %v2874_v55 = vsel %vm2862_vm5, %v2442_v46, 0.0  ;;  %v3424_v2 = vpop.f32.mrb[77].mxu0 }
 0x3ef   : > { %v2875_v50 = vadd.f32 %v2874_v55, %v2873_v45  ;;  %v2445_v52 = vpop.f32.mrb[78].mxu0  ;;  %v2903_v45 = vunpack.c.l.bf16 %v2902_v42 }
 0x3f0   : > { %v3425_v13 = vpop.f32.mrb[79].mxu0  ;;  %v2488_v54 = vpop.f32.mrb[76].mxu1 }
 0x3f1   : > { %v2876_v60 = vsel %vm2862_vm5, %v2488_v54, 0.0  ;;  %v3430_v15 = vpop.f32.mrb[77].mxu1 }
 0x3f2   : > { %v2877_v59 = vadd.f32 %v2876_v60, %v2875_v50  ;;  %v2491_v56 = vpop.f32.mrb[78].mxu1 }
 0x3f3   : > { %v3431_v57 = vpop.f32.mrb[79].mxu1 }
 0x3f4   : > { %v3089_v57 = vld [vmem:[%s4227_s6] ss:$0 sm:$0xff] }
 0x3f5   : > { %v2534_v58 = vpop.f32.mrb[80].mxu0 }
 0x3f6   : > { %v2878_v25 = vsel %vm2862_vm5, %v2534_v58, 0.0  ;;  %v3436_v4 = vpop.f32.mrb[81].mxu0 }
 0x3f7   : > { %v2879_v9 = vadd.f32 %v2878_v25, %v2877_v59  ;;  %v2537_v3 = vpop.f32.mrb[82].mxu0  ;;  %v3090_v25 = vld [vmem:[%s4228_s7] ss:$0 sm:$0xff] }
 0x3f8   : > { %v3437_v8 = vpop.f32.mrb[83].mxu0  ;;  %v2580_v5 = vpop.f32.mrb[80].mxu1 }
 0x3f9   : > { %v2880_v6 = vsel %vm2862_vm5, %v2580_v5, 0.0  ;;  %v3442_v7 = vpop.f32.mrb[81].mxu1 }
 0x3fa   : > { %v2881_v11 = vadd.f32 %v2880_v6, %v2879_v9  ;;  %v2583_v36 = vpop.f32.mrb[82].mxu1 }
 0x3fb   : > { %v3443_v23 = vpop.f32.mrb[83].mxu1 }
 0x3fd   : > { %v2626_v10 = vpop.f32.mrb[84].mxu0 }
 0x3fe   : > { %v2882_v21 = vsel %vm2862_vm5, %v2626_v10, 0.0  ;;  %v3448_v17 = vpop.f32.mrb[85].mxu0 }
 0x3ff   : > { %v2883_v37 = vadd.f32 %v2882_v21, %v2881_v11  ;;  %v2629_v19 = vpop.f32.mrb[86].mxu0 }
 0x400   : > { %v3449_v49 = vpop.f32.mrb[87].mxu0  ;;  %v2672_v22 = vpop.f32.mrb[84].mxu1 }
 0x401   : > { %v2884_v39 = vsel %vm2862_vm5, %v2672_v22, 0.0  ;;  %v3454_v14 = vpop.f32.mrb[85].mxu1 }
 0x402   : > { %v2885_v0 = vadd.f32 %v2884_v39, %v2883_v37  ;;  %v2675_v1 = vpop.f32.mrb[86].mxu1 }
 0x403   : > { %v3455_v27 = vpop.f32.mrb[87].mxu1 }
 0x405   : > { %v2718_v18 = vpop.f32.mrb[88].mxu0 }
 0x406   : > { %v2886_v28 = vsel %vm2862_vm5, %v2718_v18, 0.0  ;;  %v3460_v29 = vpop.f32.mrb[89].mxu0 }
 0x407   : > { %v2887_v16 = vadd.f32 %v2886_v28, %v2885_v0  ;;  %v2721_v12 = vpop.f32.mrb[90].mxu0 }
 0x408   : > { %v3461_v20 = vpop.f32.mrb[91].mxu0  ;;  %v2764_v48 = vpop.f32.mrb[88].mxu1 }
 0x409   : > { %v2888_v30 = vsel %vm2862_vm5, %v2764_v48, 0.0  ;;  %v3466_v31 = vpop.f32.mrb[89].mxu1 }
 0x40a   : > { %v2889_v32 = vadd.f32 %v2888_v30, %v2887_v16  ;;  %v2767_v61 = vpop.f32.mrb[90].mxu1 }
 0x40b   : > { %v3467_v24 = vpop.f32.mrb[91].mxu1 }
 0x40d   : > { %v2810_v26 = vpop.f32.mrb[92].mxu0 }
 0x40e   : > { %v2890_v33 = vsel %vm2862_vm5, %v2810_v26, 0.0  ;;  %v3472_v34 = vpop.f32.mrb[93].mxu0 }
 0x40f   : > { %v2891_v38 = vadd.f32 %v2890_v33, %v2889_v32  ;;  %v2813_v41 = vpop.f32.mrb[94].mxu0 }
 0x410   : > { %v3473_v51 = vpop.f32.mrb[95].mxu0  ;;  %v2856_v40 = vpop.f32.mrb[92].mxu1 }
 0x411   : > { %v2892_v43 = vsel %vm2862_vm5, %v2856_v40, 0.0  ;;  %v3478_v35 = vpop.f32.mrb[93].mxu1 }
 0x412   : > { %v2893_v53 = vadd.f32 %v2892_v43, %v2891_v38  ;;  %v2859_v44 = vpop.f32.mrb[94].mxu1 }
 0x413   : > { %v3479_v47 = vpop.f32.mrb[95].mxu1 }
 0x414   : > { %v2901_v62 = vadd.f32 %v3088_v63, %v2893_v53 }
 0x416   : > { %v2904_v46 = vadd.f32 %v2903_v45, %v2901_v62 }
 0x418   : > { %v2905_v55 = vsel %vm2862_vm5, %v2904_v46, 0.0 }
 0x419   : > { %2906 = vadd.xlane.f32.xlu0 %v2905_v55 }
 0x4a6   : > { %v2907_v2 = vpop.xlane.xlu0 %2906 }
 0x4a7   : > { %v2909_v50 = vmul.f32 0.015625, %v2907_v2 }
 0x4a9   : > { %v2910_v52 = vsub.f32 %v2904_v46, %v2909_v50 }
 0x4ab   : > { %v2911_v13 = vmul.f32 %v2910_v52, %v2910_v52 }
 0x4ad   : > { %v2912_v54 = vsel %vm2862_vm5, %v2911_v13, 0.0 }
 0x4ae   : > { %2913 = vadd.xlane.f32.xlu1 %v2912_v54 }
 0x53b   : > { %v2914_v60 = vpop.xlane.xlu1 %2913 }
 0x53c   : > { %v2915_v15 = vmul.f32 0.015625, %v2914_v60 }
 0x53e   : > { %v2916_v59 = vadd.f32 1e-05, %v2915_v15 }
 0x540   : > { %3554 = vrsqrt.f32 %v2916_v59 }
 0x54a   : > { %v3555_v56 = vpop.eup %3554 }
 0x54b   : > { %v2918_v58 = vmul.f32 %v3555_v56, %v2910_v52 }
 0x54d   : > { %v2926_v4 = vmul.f32 %v3089_v57, %v2918_v58 }
 0x54f   : > { %v2934_v9 = vadd.f32 %v3090_v25, %v2926_v4 }
 0x551   : > { %v2935_v3 = vpack.c.bf16 %v2934_v9, %v2934_v9 }
 0x553   : > { %2937 = vst.msk [vmem:[%s360_s21] sm:$0xf] %vm2936_vm6, %v2935_v3 }
 0x554 PF: > { %s18_s27 = sadd.s32 1, %s3562_s27  }
 0x555   : > { %p15_p4 = scmp.ge.s32.totalorder %s18_s27, 4  }
 0x557   :  { %17 = sbr.rel (!%p15_p4) target bundleno = 1 (0x1), region = 91 }

</bundles_post_ra>
